<compile_context>
chip_gen: v7x
topology: tpu7x:2x2x1
jax: 0.10.0
libtpu: 0.0.40
codegen_flags: <defaults>
</compile_context>

<pallas_src>
import functools
import math
from typing import NamedTuple, Tuple

import jax
import jax.numpy as jnp
from jax.experimental import pallas as pl
from jax.experimental.pallas import tpu as pltpu

LANE = 128
SUBLANE = 8


def _round_up(x, m):
    return ((x + m - 1) // m) * m


def _pad2(a, rows, cols, dtype):
    """Zero-pad a 2-D array to (rows, cols) and cast to dtype."""
    out = jnp.zeros((rows, cols), dtype)
    return out.at[: a.shape[0], : a.shape[1]].set(a.astype(dtype))


def _vmem_capacity_bytes():
    """Physical per-core VMEM (generation-aware); conservative fallback."""
    try:
        return int(pltpu.get_tpu_info().vmem_capacity_bytes)
    except Exception:
        return 64 << 20  # v7x per-TensorCore size = smallest current target


# ----------------------------------------------------------------------------
# Kernel
# ----------------------------------------------------------------------------
def vae_forward_kernel(
    x_ref, eps_ref,
    ew1_ref, eb1_ref, ew2_ref, eb2_ref, ew3_ref, eb3_ref,
    dw1_ref, db1_ref, dw2_ref, db2_ref, dw3_ref, db3_ref,
    recon_ref, mean_ref, logvar_ref,
    *, compute_dtype,
):
    f32 = jnp.float32
    d_lat = mean_ref.shape[-1]  # padded latent width (multiple of 128)

    x = x_ref[...].astype(compute_dtype)

    # ---- encoder: Linear -> ReLU -> Linear -> ReLU -> fused (mean|logvar) head
    h = jnp.dot(x, ew1_ref[...], preferred_element_type=f32) + eb1_ref[...]
    h = jnp.maximum(h, 0.0).astype(compute_dtype)
    h = jnp.dot(h, ew2_ref[...], preferred_element_type=f32) + eb2_ref[...]
    h = jnp.maximum(h, 0.0).astype(compute_dtype)

    # One lane-dense matmul for both heads: lanes [0, d_lat) hold the mean
    # columns, lanes [d_lat, 2*d_lat) hold the logvar columns.  d_lat is a
    # multiple of 128, so the slice below is lane-aligned and the 256-wide N
    # fills a full MXU pass on v6e/v7x.
    ml = jnp.dot(h, ew3_ref[...], preferred_element_type=f32) + eb3_ref[...]
    mean = ml[:, :d_lat]
    logvar = ml[:, d_lat:]

    # ---- reparameterize: z = eps * exp(0.5 * logvar) + mean (all f32) ----
    # Padded batch rows carry eps == 0, so they stay finite and are discarded
    # by the wrapper's final slice.
    eps = eps_ref[...].astype(f32)
    z = (eps * jnp.exp(0.5 * logvar) + mean).astype(compute_dtype)

    # ---- decoder: Linear -> ReLU -> Linear -> ReLU -> Linear ----
    d = jnp.dot(z, dw1_ref[...], preferred_element_type=f32) + db1_ref[...]
    d = jnp.maximum(d, 0.0).astype(compute_dtype)
    d = jnp.dot(d, dw2_ref[...], preferred_element_type=f32) + db2_ref[...]
    d = jnp.maximum(d, 0.0).astype(compute_dtype)
    recon = jnp.dot(d, dw3_ref[...], preferred_element_type=f32) + db3_ref[...]

    recon_ref[...] = recon.astype(recon_ref.dtype)
    mean_ref[...] = mean.astype(mean_ref.dtype)
    logvar_ref[...] = logvar.astype(logvar_ref.dtype)


# ----------------------------------------------------------------------------
# One-time parameter preparation (padding / transposed layout / fused head)
# ----------------------------------------------------------------------------
class PreparedVAEParams(NamedTuple):
    resident: Tuple          # 12 padded, VMEM-resident weight/bias arrays
    input_dim: int
    latent_dim: int
    d_in: int
    d_h1: int
    d_h2: int
    d_lat: int
    weight_dtype: jnp.dtype


def prepare_vae_params(params, *, latent_dim, weight_dtype=jnp.float32):
    """Pad/split/cast the weight set ONCE.  Reuse the result across calls."""
    input_dim, hidden_dim = params["ew1"].shape
    h2_dim = params["ew2"].shape[1]

    d_in = _round_up(input_dim, LANE)
    d_h1 = _round_up(hidden_dim, LANE)
    d_h2 = _round_up(h2_dim, LANE)
    d_lat = _round_up(latent_dim, LANE)

    ew1 = _pad2(params["ew1"], d_in, d_h1, weight_dtype)
    eb1 = _pad2(params["eb1"], 1, d_h1, jnp.float32)
    ew2 = _pad2(params["ew2"], d_h1, d_h2, weight_dtype)
    eb2 = _pad2(params["eb2"], 1, d_h2, jnp.float32)

    # Fused encoder head: mean columns in lanes [0, d_lat),
    # logvar columns in lanes [d_lat, 2*d_lat).
    ew3 = jnp.zeros((d_h2, 2 * d_lat), weight_dtype)
    ew3 = ew3.at[:h2_dim, :latent_dim].set(
        params["ew3"][:, :latent_dim].astype(weight_dtype))
    ew3 = ew3.at[:h2_dim, d_lat:d_lat + latent_dim].set(
        params["ew3"][:, latent_dim:].astype(weight_dtype))
    eb3 = jnp.zeros((1, 2 * d_lat), jnp.float32)
    eb3 = eb3.at[:, :latent_dim].set(params["eb3"][:, :latent_dim].astype(jnp.float32))
    eb3 = eb3.at[:, d_lat:d_lat + latent_dim].set(
        params["eb3"][:, latent_dim:].astype(jnp.float32))

    dw1 = _pad2(params["dw1"], d_lat, d_h1, weight_dtype)
    db1 = _pad2(params["db1"], 1, d_h1, jnp.float32)
    dw2 = _pad2(params["dw2"], d_h1, d_h2, weight_dtype)
    db2 = _pad2(params["db2"], 1, d_h2, jnp.float32)
    dw3 = _pad2(params["dw3"], d_h2, d_in, weight_dtype)
    db3 = _pad2(params["db3"], 1, d_in, jnp.float32)

    resident = tuple(jax.device_put(a) for a in
                     (ew1, eb1, ew2, eb2, ew3, eb3, dw1, db1, dw2, db2, dw3, db3))
    return PreparedVAEParams(resident, int(input_dim), int(latent_dim),
                             d_in, d_h1, d_h2, d_lat, jnp.dtype(weight_dtype))


# ----------------------------------------------------------------------------
# Forward wrapper
# ----------------------------------------------------------------------------
def vanilla_vae_forward(x, eps, prepared: PreparedVAEParams, *,
                        batch_tile=256, io_dtype=None, compute_dtype=None):
    """x: (B, input_dim), eps: (B, latent_dim).

    io_dtype: dtype of the streamed x / recon / mean / logvar HBM tiles
              (default f32; bf16 halves the dominant per-step HBM traffic).
    compute_dtype: inter-layer activation precision (default = weight dtype);
              matmuls always accumulate in f32.
    """
    batch, input_dim = x.shape
    assert input_dim == prepared.input_dim
    latent_dim = prepared.latent_dim
    assert eps.shape == (batch, latent_dim)

    d_in, d_h1, d_h2, d_lat = prepared.d_in, prepared.d_h1, prepared.d_h2, prepared.d_lat
    io_dtype = jnp.dtype(io_dtype) if io_dtype is not None else jnp.dtype(jnp.float32)
    compute_dtype = (jnp.dtype(compute_dtype) if compute_dtype is not None
                     else prepared.weight_dtype)

    # ---- VMEM budgeting (generation-aware) ----
    vmem_cap = _vmem_capacity_bytes()
    vmem_usable = max(32 << 20, vmem_cap - (8 << 20))  # leave compiler headroom
    weight_bytes = sum(int(a.size) * jnp.dtype(a.dtype).itemsize
                       for a in prepared.resident)
    io_isz = io_dtype.itemsize
    # Streamed bytes per batch row: x + eps in, recon + mean + logvar out.
    stream_row = io_isz * (2 * d_in + 2 * d_lat) + 4 * d_lat
    # Rough live-intermediate bytes per row (f32 activations inside the body).
    interm_row = 4 * (2 * d_h1 + 2 * d_h2 + 4 * d_lat + d_in)
    # Budget weights at 2x so the Buffered(1)-unsupported fallback still fits.
    avail_for_act = max(0, vmem_usable - 2 * weight_bytes)
    per_row = 2 * stream_row + interm_row
    max_tb = max(SUBLANE, (avail_for_act // max(per_row, 1)) // SUBLANE * SUBLANE)

    # ---- batch tile: multiple of 8, capped by VMEM, and capped so the grid
    # has >= 2 steps whenever the batch allows it (v7x megacore sharding). ----
    b_pad8 = _round_up(batch, SUBLANE)
    tb = min(batch_tile, b_pad8, max_tb)
    if b_pad8 >= 2 * SUBLANE:
        tb = min(tb, _round_up(b_pad8 // 2, SUBLANE))
    tb = max(SUBLANE, (tb // SUBLANE) * SUBLANE)
    b_pad = _round_up(batch, tb)
    grid = (b_pad // tb,)

    # ---- pad activations (zero padding is exact: padded columns stay zero,
    # padded rows are finite and sliced off at the end). ----
    x_p = _pad2(x, b_pad, d_in, io_dtype)
    eps_p = _pad2(eps, b_pad, d_lat, jnp.float32)

    est = 2 * weight_bytes + tb * (2 * stream_row + interm_row) + (4 << 20)
    vmem_limit = int(min(max(est, 32 << 20), vmem_usable))

    flops = 2 * b_pad * (d_in * d_h1 + d_h1 * d_h2 + d_h2 * (2 * d_lat)
                         + d_lat * d_h1 + d_h1 * d_h2 + d_h2 * d_in)
    cost = pl.CostEstimate(flops=int(flops),
                           transcendentals=int(b_pad * d_lat),
                           bytes_accessed=int(weight_bytes + b_pad * stream_row))

    kernel = functools.partial(vae_forward_kernel, compute_dtype=compute_dtype)

    def act_spec(d):
        return pl.BlockSpec((tb, d), lambda i: (i, 0))

    def res_spec(a, mode):
        # Full-array block + constant index map -> stays VMEM-resident across
        # grid steps (no re-DMA).  `mode` controls the buffer count.
        if mode is None:
            return pl.BlockSpec(a.shape, lambda i: (0, 0))
        return pl.BlockSpec(a.shape, lambda i: (0, 0), pipeline_mode=mode)

    def run(weight_mode):
        in_specs = [act_spec(d_in), act_spec(d_lat)] + [
            res_spec(a, weight_mode) for a in prepared.resident]
        out_specs = (act_spec(d_in), act_spec(d_lat), act_spec(d_lat))
        return pl.pallas_call(
            kernel,
            out_shape=(
                jax.ShapeDtypeStruct((b_pad, d_in), io_dtype),
                jax.ShapeDtypeStruct((b_pad, d_lat), io_dtype),
                jax.ShapeDtypeStruct((b_pad, d_lat), io_dtype),
            ),
            grid_spec=pltpu.PrefetchScalarGridSpec(
                num_scalar_prefetch=0,
                grid=grid,
                in_specs=in_specs,
                out_specs=out_specs,
            ),
            compiler_params=pltpu.CompilerParams(
                dimension_semantics=("parallel",),
                vmem_limit_bytes=vmem_limit,
            ),
            cost_estimate=cost,
        )(x_p, eps_p, *prepared.resident)

    try:
        # Single-buffer the grid-invariant weights: the block never changes,
        # so double-buffering it only burns VMEM.
        recon_p, mean_p, logvar_p = run(pl.Buffered(buffer_count=1))
    except Exception:
        # Compatibility fallback: default (double-buffered) weight blocks.
        recon_p, mean_p, logvar_p = run(None)

    return (recon_p[:batch, :input_dim],
            mean_p[:batch, :latent_dim],
            logvar_p[:batch, :latent_dim])


# ----------------------------------------------------------------------------
# Parameter init (PyTorch-like uniform init, pre-transposed layout) + reference
# ----------------------------------------------------------------------------
def init_linear(key, fan_in, fan_out):
    kw, kb = jax.random.split(key)
    bound = 1.0 / math.sqrt(fan_in)
    w = jax.random.uniform(kw, (fan_in, fan_out), jnp.float32, -bound, bound)
    b = jax.random.uniform(kb, (1, fan_out), jnp.float32, -bound, bound)
    return w, b


def init_vae_params(key, input_dim, hidden_dim, latent_dim):
    keys = jax.random.split(key, 6)
    h2 = hidden_dim // 2
    p = {}
    # encoder: input_dim -> hidden_dim -> hidden_dim//2 -> latent_dim*2
    p["ew1"], p["eb1"] = init_linear(keys[0], input_dim, hidden_dim)
    p["ew2"], p["eb2"] = init_linear(keys[1], hidden_dim, h2)
    p["ew3"], p["eb3"] = init_linear(keys[2], h2, latent_dim * 2)
    # decoder: latent_dim -> hidden_dim -> hidden_dim//2 -> input_dim
    p["dw1"], p["db1"] = init_linear(keys[3], latent_dim, hidden_dim)
    p["dw2"], p["db2"] = init_linear(keys[4], hidden_dim, h2)
    p["dw3"], p["db3"] = init_linear(keys[5], h2, input_dim)
    return p


def ref_forward(x, eps, p, latent_dim):
    hp = functools.partial(jnp.dot, precision=jax.lax.Precision.HIGHEST)
    h = jnp.maximum(hp(x, p["ew1"]) + p["eb1"], 0.0)
    h = jnp.maximum(hp(h, p["ew2"]) + p["eb2"], 0.0)
    enc = hp(h, p["ew3"]) + p["eb3"]
    m, lv = enc[:, :latent_dim], enc[:, latent_dim:]
    z = eps * jnp.exp(0.5 * lv) + m
    d = jnp.maximum(hp(z, p["dw1"]) + p["db1"], 0.0)
    d = jnp.maximum(hp(d, p["dw2"]) + p["db2"], 0.0)
    return hp(d, p["dw3"]) + p["db3"], m, lv


if __name__ == "__main__":
    root = jax.random.PRNGKey(0)
    k_params, k_x, k_eps, k_x2, k_eps2 = jax.random.split(root, 5)

    # ---- small demo (f32 weights, f32 io) ----
    batch, input_dim, hidden_dim, latent_dim = 8, 16, 32, 8
    params = init_vae_params(k_params, input_dim, hidden_dim, latent_dim)
    prepared_f32 = prepare_vae_params(params, latent_dim=latent_dim)  # pad ONCE
    x = jax.random.normal(k_x, (batch, input_dim), jnp.float32)
    eps = jax.random.normal(k_eps, (batch, latent_dim), jnp.float32)

    recon, mean, logvar = vanilla_vae_forward(x, eps, prepared_f32)
    jax.block_until_ready((recon, mean, logvar))
    assert recon.shape == (batch, input_dim)
    assert mean.shape == (batch, latent_dim)
    assert logvar.shape == (batch, latent_dim)

    r_ref, m_ref, lv_ref = ref_forward(x, eps, params, latent_dim)
    assert jnp.allclose(recon, r_ref, atol=1e-4, rtol=1e-4)
    assert jnp.allclose(mean, m_ref, atol=1e-4, rtol=1e-4)
    assert jnp.allclose(logvar, lv_ref, atol=1e-4, rtol=1e-4)

    # ---- bf16 weights, f32 compute (explicit precision flag) ----
    prepared_bf16 = prepare_vae_params(params, latent_dim=latent_dim,
                                       weight_dtype=jnp.bfloat16)
    r_wq, m_wq, lv_wq = vanilla_vae_forward(x, eps, prepared_bf16,
                                            compute_dtype=jnp.float32)
    jax.block_until_ready((r_wq, m_wq, lv_wq))
    assert jnp.allclose(r_wq, r_ref, atol=1e-1, rtol=1e-1)
    assert jnp.allclose(m_wq, m_ref, atol=1e-1, rtol=1e-1)
    assert jnp.allclose(lv_wq, lv_ref, atol=1e-1, rtol=1e-1)

    # ---- bf16 weights + bf16 compute + bf16 activation streams (min HBM) ----
    r_bf, m_bf, lv_bf = vanilla_vae_forward(x, eps, prepared_bf16,
                                            io_dtype=jnp.bfloat16)
    jax.block_until_ready((r_bf, m_bf, lv_bf))
    assert r_bf.dtype == jnp.bfloat16 and m_bf.dtype == jnp.bfloat16
    assert bool(jnp.all(jnp.isfinite(r_bf.astype(jnp.float32))))
    assert jnp.allclose(r_bf.astype(jnp.float32), r_ref, atol=2e-1, rtol=2e-1)
    assert jnp.allclose(m_bf.astype(jnp.float32), m_ref, atol=2e-1, rtol=2e-1)
    assert jnp.allclose(lv_bf.astype(jnp.float32), lv_ref, atol=2e-1, rtol=2e-1)

    # ---- multi-tile grid check: batch > tile, non-trivial padded dims ----
    b2, in2, hid2, lat2 = 300, 96, 160, 24
    params2 = init_vae_params(jax.random.PRNGKey(1), in2, hid2, lat2)
    prepared2 = prepare_vae_params(params2, latent_dim=lat2)
    x2 = jax.random.normal(k_x2, (b2, in2), jnp.float32)
    eps2 = jax.random.normal(k_eps2, (b2, lat2), jnp.float32)
    r2, m2, lv2 = vanilla_vae_forward(x2, eps2, prepared2)
    jax.block_until_ready((r2, m2, lv2))
    r2_ref, m2_ref, lv2_ref = ref_forward(x2, eps2, params2, lat2)
    assert r2.shape == (b2, in2) and m2.shape == (b2, lat2) and lv2.shape == (b2, lat2)
    assert jnp.allclose(r2, r2_ref, atol=1e-3, rtol=1e-3)
    assert jnp.allclose(m2, m2_ref, atol=1e-3, rtol=1e-3)
    assert jnp.allclose(lv2, lv2_ref, atol=1e-3, rtol=1e-3)

    print("KERNEL_OK")
</pallas_src>

<mosaic_0001>
module attributes {stable_mosaic.version = 11 : i64} {
  func.func @vae_forward_kernel(%arg0: i32, %arg1: memref<8x128xf32, #tpu.memory_space<vmem>>, %arg2: memref<8x128xf32, #tpu.memory_space<vmem>>, %arg3: memref<128x128xf32, #tpu.memory_space<vmem>>, %arg4: memref<1x128xf32, #tpu.memory_space<vmem>>, %arg5: memref<128x128xf32, #tpu.memory_space<vmem>>, %arg6: memref<1x128xf32, #tpu.memory_space<vmem>>, %arg7: memref<128x256xf32, #tpu.memory_space<vmem>>, %arg8: memref<1x256xf32, #tpu.memory_space<vmem>>, %arg9: memref<128x128xf32, #tpu.memory_space<vmem>>, %arg10: memref<1x128xf32, #tpu.memory_space<vmem>>, %arg11: memref<128x128xf32, #tpu.memory_space<vmem>>, %arg12: memref<1x128xf32, #tpu.memory_space<vmem>>, %arg13: memref<128x128xf32, #tpu.memory_space<vmem>>, %arg14: memref<1x128xf32, #tpu.memory_space<vmem>>, %arg15: memref<8x128xf32, #tpu.memory_space<vmem>>, %arg16: memref<8x128xf32, #tpu.memory_space<vmem>>, %arg17: memref<8x128xf32, #tpu.memory_space<vmem>>) attributes {dimension_semantics = [#tpu.dimension_semantics<parallel>], iteration_bounds = array<i64: 1>, scalar_prefetch = 0 : i64, scratch_operands = 0 : i64, tpu.core_type = #tpu.core_type<tc>, window_params = [{transform_indices = @transform_0, window_bounds = array<i64: 8, 128>}, {transform_indices = @transform_1, window_bounds = array<i64: 8, 128>}, {pipeline_mode = #tpu.pipeline_mode<synchronous>, transform_indices = @transform_2, window_bounds = array<i64: 128, 128>}, {pipeline_mode = #tpu.pipeline_mode<synchronous>, transform_indices = @transform_3, window_bounds = array<i64: 1, 128>}, {pipeline_mode = #tpu.pipeline_mode<synchronous>, transform_indices = @transform_4, window_bounds = array<i64: 128, 128>}, {pipeline_mode = #tpu.pipeline_mode<synchronous>, transform_indices = @transform_5, window_bounds = array<i64: 1, 128>}, {pipeline_mode = #tpu.pipeline_mode<synchronous>, transform_indices = @transform_6, window_bounds = array<i64: 128, 256>}, {pipeline_mode = #tpu.pipeline_mode<synchronous>, transform_indices = @transform_7, window_bounds = array<i64: 1, 256>}, {pipeline_mode = #tpu.pipeline_mode<synchronous>, transform_indices = @transform_8, window_bounds = array<i64: 128, 128>}, {pipeline_mode = #tpu.pipeline_mode<synchronous>, transform_indices = @transform_9, window_bounds = array<i64: 1, 128>}, {pipeline_mode = #tpu.pipeline_mode<synchronous>, transform_indices = @transform_10, window_bounds = array<i64: 128, 128>}, {pipeline_mode = #tpu.pipeline_mode<synchronous>, transform_indices = @transform_11, window_bounds = array<i64: 1, 128>}, {pipeline_mode = #tpu.pipeline_mode<synchronous>, transform_indices = @transform_12, window_bounds = array<i64: 128, 128>}, {pipeline_mode = #tpu.pipeline_mode<synchronous>, transform_indices = @transform_13, window_bounds = array<i64: 1, 128>}, {transform_indices = @transform_14, window_bounds = array<i64: 8, 128>}, {transform_indices = @transform_15, window_bounds = array<i64: 8, 128>}, {transform_indices = @transform_16, window_bounds = array<i64: 8, 128>}]} {
    %c0 = arith.constant 0 : index
    %c0_0 = arith.constant 0 : index
    %0 = vector.load %arg1[%c0, %c0_0] : memref<8x128xf32, #tpu.memory_space<vmem>>, vector<8x128xf32>
    %c0_1 = arith.constant 0 : index
    %c0_2 = arith.constant 0 : index
    %1 = vector.load %arg3[%c0_1, %c0_2] : memref<128x128xf32, #tpu.memory_space<vmem>>, vector<128x128xf32>
    %cst = arith.constant dense<0.000000e+00> : vector<8x128xf32>
    %2 = tpu.matmul %0, %1, %cst {dimension_numbers = #tpu.dot_dimension_numbers<[1], [0], [0], [1], [0, 0, 1, 1], [], []>} : vector<8x128xf32>, vector<128x128xf32>, vector<8x128xf32> -> vector<8x128xf32>
    %c0_3 = arith.constant 0 : index
    %c0_4 = arith.constant 0 : index
    %3 = vector.load %arg4[%c0_3, %c0_4] : memref<1x128xf32, #tpu.memory_space<vmem>>, vector<1x128xf32>
    %4 = vector.broadcast %3 : vector<1x128xf32> to vector<8x128xf32>
    %5 = arith.addf %2, %4 : vector<8x128xf32>
    %cst_5 = arith.constant 0.000000e+00 : f32
    %6 = vector.broadcast %cst_5 : f32 to vector<8x128xf32>
    %7 = arith.maximumf %5, %6 : vector<8x128xf32>
    %c0_6 = arith.constant 0 : index
    %c0_7 = arith.constant 0 : index
    %8 = vector.load %arg5[%c0_6, %c0_7] : memref<128x128xf32, #tpu.memory_space<vmem>>, vector<128x128xf32>
    %cst_8 = arith.constant dense<0.000000e+00> : vector<8x128xf32>
    %9 = tpu.matmul %7, %8, %cst_8 {dimension_numbers = #tpu.dot_dimension_numbers<[1], [0], [0], [1], [0, 0, 1, 1], [], []>} : vector<8x128xf32>, vector<128x128xf32>, vector<8x128xf32> -> vector<8x128xf32>
    %c0_9 = arith.constant 0 : index
    %c0_10 = arith.constant 0 : index
    %10 = vector.load %arg6[%c0_9, %c0_10] : memref<1x128xf32, #tpu.memory_space<vmem>>, vector<1x128xf32>
    %11 = vector.broadcast %10 : vector<1x128xf32> to vector<8x128xf32>
    %12 = arith.addf %9, %11 : vector<8x128xf32>
    %cst_11 = arith.constant 0.000000e+00 : f32
    %13 = vector.broadcast %cst_11 : f32 to vector<8x128xf32>
    %14 = arith.maximumf %12, %13 : vector<8x128xf32>
    %c0_12 = arith.constant 0 : index
    %c0_13 = arith.constant 0 : index
    %15 = vector.load %arg7[%c0_12, %c0_13] : memref<128x256xf32, #tpu.memory_space<vmem>>, vector<128x256xf32>
    %cst_14 = arith.constant dense<0.000000e+00> : vector<8x256xf32>
    %16 = tpu.matmul %14, %15, %cst_14 {dimension_numbers = #tpu.dot_dimension_numbers<[1], [0], [0], [1], [0, 0, 1, 1], [], []>} : vector<8x128xf32>, vector<128x256xf32>, vector<8x256xf32> -> vector<8x256xf32>
    %c0_15 = arith.constant 0 : index
    %c0_16 = arith.constant 0 : index
    %17 = vector.load %arg8[%c0_15, %c0_16] : memref<1x256xf32, #tpu.memory_space<vmem>>, vector<1x256xf32>
    %18 = vector.broadcast %17 : vector<1x256xf32> to vector<8x256xf32>
    %19 = arith.addf %16, %18 : vector<8x256xf32>
    %20 = vector.extract_strided_slice %19 {offsets = [0, 0], sizes = [8, 128], strides = [1, 1]} : vector<8x256xf32> to vector<8x128xf32>
    %21 = vector.extract_strided_slice %19 {offsets = [0, 128], sizes = [8, 128], strides = [1, 1]} : vector<8x256xf32> to vector<8x128xf32>
    %c0_17 = arith.constant 0 : index
    %c0_18 = arith.constant 0 : index
    %22 = vector.load %arg2[%c0_17, %c0_18] : memref<8x128xf32, #tpu.memory_space<vmem>>, vector<8x128xf32>
    %cst_19 = arith.constant 5.000000e-01 : f32
    %23 = vector.broadcast %cst_19 : f32 to vector<8x128xf32>
    %24 = arith.mulf %23, %21 : vector<8x128xf32>
    %25 = math.exp %24 : vector<8x128xf32>
    %26 = arith.mulf %22, %25 : vector<8x128xf32>
    %27 = arith.addf %26, %20 : vector<8x128xf32>
    %c0_20 = arith.constant 0 : index
    %c0_21 = arith.constant 0 : index
    %28 = vector.load %arg9[%c0_20, %c0_21] : memref<128x128xf32, #tpu.memory_space<vmem>>, vector<128x128xf32>
    %cst_22 = arith.constant dense<0.000000e+00> : vector<8x128xf32>
    %29 = tpu.matmul %27, %28, %cst_22 {dimension_numbers = #tpu.dot_dimension_numbers<[1], [0], [0], [1], [0, 0, 1, 1], [], []>} : vector<8x128xf32>, vector<128x128xf32>, vector<8x128xf32> -> vector<8x128xf32>
    %c0_23 = arith.constant 0 : index
    %c0_24 = arith.constant 0 : index
    %30 = vector.load %arg10[%c0_23, %c0_24] : memref<1x128xf32, #tpu.memory_space<vmem>>, vector<1x128xf32>
    %31 = vector.broadcast %30 : vector<1x128xf32> to vector<8x128xf32>
    %32 = arith.addf %29, %31 : vector<8x128xf32>
    %cst_25 = arith.constant 0.000000e+00 : f32
    %33 = vector.broadcast %cst_25 : f32 to vector<8x128xf32>
    %34 = arith.maximumf %32, %33 : vector<8x128xf32>
    %c0_26 = arith.constant 0 : index
    %c0_27 = arith.constant 0 : index
    %35 = vector.load %arg11[%c0_26, %c0_27] : memref<128x128xf32, #tpu.memory_space<vmem>>, vector<128x128xf32>
    %cst_28 = arith.constant dense<0.000000e+00> : vector<8x128xf32>
    %36 = tpu.matmul %34, %35, %cst_28 {dimension_numbers = #tpu.dot_dimension_numbers<[1], [0], [0], [1], [0, 0, 1, 1], [], []>} : vector<8x128xf32>, vector<128x128xf32>, vector<8x128xf32> -> vector<8x128xf32>
    %c0_29 = arith.constant 0 : index
    %c0_30 = arith.constant 0 : index
    %37 = vector.load %arg12[%c0_29, %c0_30] : memref<1x128xf32, #tpu.memory_space<vmem>>, vector<1x128xf32>
    %38 = vector.broadcast %37 : vector<1x128xf32> to vector<8x128xf32>
    %39 = arith.addf %36, %38 : vector<8x128xf32>
    %cst_31 = arith.constant 0.000000e+00 : f32
    %40 = vector.broadcast %cst_31 : f32 to vector<8x128xf32>
    %41 = arith.maximumf %39, %40 : vector<8x128xf32>
    %c0_32 = arith.constant 0 : index
    %c0_33 = arith.constant 0 : index
    %42 = vector.load %arg13[%c0_32, %c0_33] : memref<128x128xf32, #tpu.memory_space<vmem>>, vector<128x128xf32>
    %cst_34 = arith.constant dense<0.000000e+00> : vector<8x128xf32>
    %43 = tpu.matmul %41, %42, %cst_34 {dimension_numbers = #tpu.dot_dimension_numbers<[1], [0], [0], [1], [0, 0, 1, 1], [], []>} : vector<8x128xf32>, vector<128x128xf32>, vector<8x128xf32> -> vector<8x128xf32>
    %c0_35 = arith.constant 0 : index
    %c0_36 = arith.constant 0 : index
    %44 = vector.load %arg14[%c0_35, %c0_36] : memref<1x128xf32, #tpu.memory_space<vmem>>, vector<1x128xf32>
    %45 = vector.broadcast %44 : vector<1x128xf32> to vector<8x128xf32>
    %46 = arith.addf %43, %45 : vector<8x128xf32>
    %c0_37 = arith.constant 0 : index
    %c0_38 = arith.constant 0 : index
    %47 = vector.load %arg15[%c0_37, %c0_38] : memref<8x128xf32, #tpu.memory_space<vmem>>, vector<8x128xf32>
    tpu.vector_store %arg15[%c0_37, %c0_38], %46 {strides = array<i32>} : memref<8x128xf32, #tpu.memory_space<vmem>>, vector<8x128xf32>,
    %c0_39 = arith.constant 0 : index
    %c0_40 = arith.constant 0 : index
    %48 = vector.load %arg16[%c0_39, %c0_40] : memref<8x128xf32, #tpu.memory_space<vmem>>, vector<8x128xf32>
    tpu.vector_store %arg16[%c0_39, %c0_40], %20 {strides = array<i32>} : memref<8x128xf32, #tpu.memory_space<vmem>>, vector<8x128xf32>,
    %c0_41 = arith.constant 0 : index
    %c0_42 = arith.constant 0 : index
    %49 = vector.load %arg17[%c0_41, %c0_42] : memref<8x128xf32, #tpu.memory_space<vmem>>, vector<8x128xf32>
    tpu.vector_store %arg17[%c0_41, %c0_42], %21 {strides = array<i32>} : memref<8x128xf32, #tpu.memory_space<vmem>>, vector<8x128xf32>,
    return
  }
  func.func @transform_0(%arg0: i32) -> (i32, i32) {
    %c0_i32 = arith.constant 0 : i32
    %c0_i32_0 = arith.constant 0 : i32
    return %arg0, %c0_i32 : i32, i32
  }
  func.func @transform_1(%arg0: i32) -> (i32, i32) {
    %c0_i32 = arith.constant 0 : i32
    %c0_i32_0 = arith.constant 0 : i32
    return %arg0, %c0_i32 : i32, i32
  }
  func.func @transform_2(%arg0: i32) -> (i32, i32) {
    %c0_i32 = arith.constant 0 : i32
    %c0_i32_0 = arith.constant 0 : i32
    %c0_i32_1 = arith.constant 0 : i32
    return %c0_i32, %c0_i32_0 : i32, i32
  }
  func.func @transform_3(%arg0: i32) -> (i32, i32) {
    %c0_i32 = arith.constant 0 : i32
    %c0_i32_0 = arith.constant 0 : i32
    %c0_i32_1 = arith.constant 0 : i32
    return %c0_i32, %c0_i32_0 : i32, i32
  }
  func.func @transform_4(%arg0: i32) -> (i32, i32) {
    %c0_i32 = arith.constant 0 : i32
    %c0_i32_0 = arith.constant 0 : i32
    %c0_i32_1 = arith.constant 0 : i32
    return %c0_i32, %c0_i32_0 : i32, i32
  }
  func.func @transform_5(%arg0: i32) -> (i32, i32) {
    %c0_i32 = arith.constant 0 : i32
    %c0_i32_0 = arith.constant 0 : i32
    %c0_i32_1 = arith.constant 0 : i32
    return %c0_i32, %c0_i32_0 : i32, i32
  }
  func.func @transform_6(%arg0: i32) -> (i32, i32) {
    %c0_i32 = arith.constant 0 : i32
    %c0_i32_0 = arith.constant 0 : i32
    %c0_i32_1 = arith.constant 0 : i32
    return %c0_i32, %c0_i32_0 : i32, i32
  }
  func.func @transform_7(%arg0: i32) -> (i32, i32) {
    %c0_i32 = arith.constant 0 : i32
    %c0_i32_0 = arith.constant 0 : i32
    %c0_i32_1 = arith.constant 0 : i32
    return %c0_i32, %c0_i32_0 : i32, i32
  }
  func.func @transform_8(%arg0: i32) -> (i32, i32) {
    %c0_i32 = arith.constant 0 : i32
    %c0_i32_0 = arith.constant 0 : i32
    %c0_i32_1 = arith.constant 0 : i32
    return %c0_i32, %c0_i32_0 : i32, i32
  }
  func.func @transform_9(%arg0: i32) -> (i32, i32) {
    %c0_i32 = arith.constant 0 : i32
    %c0_i32_0 = arith.constant 0 : i32
    %c0_i32_1 = arith.constant 0 : i32
    return %c0_i32, %c0_i32_0 : i32, i32
  }
  func.func @transform_10(%arg0: i32) -> (i32, i32) {
    %c0_i32 = arith.constant 0 : i32
    %c0_i32_0 = arith.constant 0 : i32
    %c0_i32_1 = arith.constant 0 : i32
    return %c0_i32, %c0_i32_0 : i32, i32
  }
  func.func @transform_11(%arg0: i32) -> (i32, i32) {
    %c0_i32 = arith.constant 0 : i32
    %c0_i32_0 = arith.constant 0 : i32
    %c0_i32_1 = arith.constant 0 : i32
    return %c0_i32, %c0_i32_0 : i32, i32
  }
  func.func @transform_12(%arg0: i32) -> (i32, i32) {
    %c0_i32 = arith.constant 0 : i32
    %c0_i32_0 = arith.constant 0 : i32
    %c0_i32_1 = arith.constant 0 : i32
    return %c0_i32, %c0_i32_0 : i32, i32
  }
  func.func @transform_13(%arg0: i32) -> (i32, i32) {
    %c0_i32 = arith.constant 0 : i32
    %c0_i32_0 = arith.constant 0 : i32
    %c0_i32_1 = arith.constant 0 : i32
    return %c0_i32, %c0_i32_0 : i32, i32
  }
  func.func @transform_14(%arg0: i32) -> (i32, i32) {
    %c0_i32 = arith.constant 0 : i32
    %c0_i32_0 = arith.constant 0 : i32
    return %arg0, %c0_i32 : i32, i32
  }
  func.func @transform_15(%arg0: i32) -> (i32, i32) {
    %c0_i32 = arith.constant 0 : i32
    %c0_i32_0 = arith.constant 0 : i32
    return %arg0, %c0_i32 : i32, i32
  }
  func.func @transform_16(%arg0: i32) -> (i32, i32) {
    %c0_i32 = arith.constant 0 : i32
    %c0_i32_0 = arith.constant 0 : i32
    return %arg0, %c0_i32 : i32, i32
  }
}

module attributes {stable_mosaic.version = 11 : i64} {
  func.func @vae_forward_kernel(%arg0: i32, %arg1: memref<8x128xf32, #tpu.memory_space<vmem>>, %arg2: memref<8x128xf32, #tpu.memory_space<vmem>>, %arg3: memref<128x128xf32, #tpu.memory_space<vmem>>, %arg4: memref<1x128xf32, #tpu.memory_space<vmem>>, %arg5: memref<128x128xf32, #tpu.memory_space<vmem>>, %arg6: memref<1x128xf32, #tpu.memory_space<vmem>>, %arg7: memref<128x256xf32, #tpu.memory_space<vmem>>, %arg8: memref<1x256xf32, #tpu.memory_space<vmem>>, %arg9: memref<128x128xf32, #tpu.memory_space<vmem>>, %arg10: memref<1x128xf32, #tpu.memory_space<vmem>>, %arg11: memref<128x128xf32, #tpu.memory_space<vmem>>, %arg12: memref<1x128xf32, #tpu.memory_space<vmem>>, %arg13: memref<128x128xf32, #tpu.memory_space<vmem>>, %arg14: memref<1x128xf32, #tpu.memory_space<vmem>>, %arg15: memref<8x128xf32, #tpu.memory_space<vmem>>, %arg16: memref<8x128xf32, #tpu.memory_space<vmem>>, %arg17: memref<8x128xf32, #tpu.memory_space<vmem>>) attributes {dimension_semantics = [#tpu.dimension_semantics<parallel>], iteration_bounds = array<i64: 1>, scalar_prefetch = 0 : i64, scratch_operands = 0 : i64, tpu.core_type = #tpu.core_type<tc>, window_params = [{transform_indices = @transform_0, window_bounds = array<i64: 8, 128>}, {transform_indices = @transform_1, window_bounds = array<i64: 8, 128>}, {pipeline_mode = #tpu.pipeline_mode<synchronous>, transform_indices = @transform_2, window_bounds = array<i64: 128, 128>}, {pipeline_mode = #tpu.pipeline_mode<synchronous>, transform_indices = @transform_3, window_bounds = array<i64: 1, 128>}, {pipeline_mode = #tpu.pipeline_mode<synchronous>, transform_indices = @transform_4, window_bounds = array<i64: 128, 128>}, {pipeline_mode = #tpu.pipeline_mode<synchronous>, transform_indices = @transform_5, window_bounds = array<i64: 1, 128>}, {pipeline_mode = #tpu.pipeline_mode<synchronous>, transform_indices = @transform_6, window_bounds = array<i64: 128, 256>}, {pipeline_mode = #tpu.pipeline_mode<synchronous>, transform_indices = @transform_7, window_bounds = array<i64: 1, 256>}, {pipeline_mode = #tpu.pipeline_mode<synchronous>, transform_indices = @transform_8, window_bounds = array<i64: 128, 128>}, {pipeline_mode = #tpu.pipeline_mode<synchronous>, transform_indices = @transform_9, window_bounds = array<i64: 1, 128>}, {pipeline_mode = #tpu.pipeline_mode<synchronous>, transform_indices = @transform_10, window_bounds = array<i64: 128, 128>}, {pipeline_mode = #tpu.pipeline_mode<synchronous>, transform_indices = @transform_11, window_bounds = array<i64: 1, 128>}, {pipeline_mode = #tpu.pipeline_mode<synchronous>, transform_indices = @transform_12, window_bounds = array<i64: 128, 128>}, {pipeline_mode = #tpu.pipeline_mode<synchronous>, transform_indices = @transform_13, window_bounds = array<i64: 1, 128>}, {transform_indices = @transform_14, window_bounds = array<i64: 8, 128>}, {transform_indices = @transform_15, window_bounds = array<i64: 8, 128>}, {transform_indices = @transform_16, window_bounds = array<i64: 8, 128>}]} {
    %c0 = arith.constant 0 : index
    %c0_0 = arith.constant 0 : index
    %0 = vector.load %arg1[%c0, %c0_0] : memref<8x128xf32, #tpu.memory_space<vmem>>, vector<8x128xf32>
    %c0_1 = arith.constant 0 : index
    %c0_2 = arith.constant 0 : index
    %1 = vector.load %arg3[%c0_1, %c0_2] : memref<128x128xf32, #tpu.memory_space<vmem>>, vector<128x128xf32>
    %cst = arith.constant dense<0.000000e+00> : vector<8x128xf32>
    %2 = tpu.matmul %0, %1, %cst {dimension_numbers = #tpu.dot_dimension_numbers<[1], [0], [0], [1], [0, 0, 1, 1], [], []>} : vector<8x128xf32>, vector<128x128xf32>, vector<8x128xf32> -> vector<8x128xf32>
    %c0_3 = arith.constant 0 : index
    %c0_4 = arith.constant 0 : index
    %3 = vector.load %arg4[%c0_3, %c0_4] : memref<1x128xf32, #tpu.memory_space<vmem>>, vector<1x128xf32>
    %4 = vector.broadcast %3 : vector<1x128xf32> to vector<8x128xf32>
    %5 = arith.addf %2, %4 : vector<8x128xf32>
    %cst_5 = arith.constant 0.000000e+00 : f32
    %6 = vector.broadcast %cst_5 : f32 to vector<8x128xf32>
    %7 = arith.maximumf %5, %6 : vector<8x128xf32>
    %c0_6 = arith.constant 0 : index
    %c0_7 = arith.constant 0 : index
    %8 = vector.load %arg5[%c0_6, %c0_7] : memref<128x128xf32, #tpu.memory_space<vmem>>, vector<128x128xf32>
    %cst_8 = arith.constant dense<0.000000e+00> : vector<8x128xf32>
    %9 = tpu.matmul %7, %8, %cst_8 {dimension_numbers = #tpu.dot_dimension_numbers<[1], [0], [0], [1], [0, 0, 1, 1], [], []>} : vector<8x128xf32>, vector<128x128xf32>, vector<8x128xf32> -> vector<8x128xf32>
    %c0_9 = arith.constant 0 : index
    %c0_10 = arith.constant 0 : index
    %10 = vector.load %arg6[%c0_9, %c0_10] : memref<1x128xf32, #tpu.memory_space<vmem>>, vector<1x128xf32>
    %11 = vector.broadcast %10 : vector<1x128xf32> to vector<8x128xf32>
    %12 = arith.addf %9, %11 : vector<8x128xf32>
    %cst_11 = arith.constant 0.000000e+00 : f32
    %13 = vector.broadcast %cst_11 : f32 to vector<8x128xf32>
    %14 = arith.maximumf %12, %13 : vector<8x128xf32>
    %c0_12 = arith.constant 0 : index
    %c0_13 = arith.constant 0 : index
    %15 = vector.load %arg7[%c0_12, %c0_13] : memref<128x256xf32, #tpu.memory_space<vmem>>, vector<128x256xf32>
    %cst_14 = arith.constant dense<0.000000e+00> : vector<8x256xf32>
    %16 = tpu.matmul %14, %15, %cst_14 {dimension_numbers = #tpu.dot_dimension_numbers<[1], [0], [0], [1], [0, 0, 1, 1], [], []>} : vector<8x128xf32>, vector<128x256xf32>, vector<8x256xf32> -> vector<8x256xf32>
    %c0_15 = arith.constant 0 : index
    %c0_16 = arith.constant 0 : index
    %17 = vector.load %arg8[%c0_15, %c0_16] : memref<1x256xf32, #tpu.memory_space<vmem>>, vector<1x256xf32>
    %18 = vector.broadcast %17 : vector<1x256xf32> to vector<8x256xf32>
    %19 = arith.addf %16, %18 : vector<8x256xf32>
    %20 = vector.extract_strided_slice %19 {offsets = [0, 0], sizes = [8, 128], strides = [1, 1]} : vector<8x256xf32> to vector<8x128xf32>
    %21 = vector.extract_strided_slice %19 {offsets = [0, 128], sizes = [8, 128], strides = [1, 1]} : vector<8x256xf32> to vector<8x128xf32>
    %c0_17 = arith.constant 0 : index
    %c0_18 = arith.constant 0 : index
    %22 = vector.load %arg2[%c0_17, %c0_18] : memref<8x128xf32, #tpu.memory_space<vmem>>, vector<8x128xf32>
    %cst_19 = arith.constant 5.000000e-01 : f32
    %23 = vector.broadcast %cst_19 : f32 to vector<8x128xf32>
    %24 = arith.mulf %23, %21 : vector<8x128xf32>
    %25 = math.exp %24 : vector<8x128xf32>
    %26 = arith.mulf %22, %25 : vector<8x128xf32>
    %27 = arith.addf %26, %20 : vector<8x128xf32>
    %c0_20 = arith.constant 0 : index
    %c0_21 = arith.constant 0 : index
    %28 = vector.load %arg9[%c0_20, %c0_21] : memref<128x128xf32, #tpu.memory_space<vmem>>, vector<128x128xf32>
    %cst_22 = arith.constant dense<0.000000e+00> : vector<8x128xf32>
    %29 = tpu.matmul %27, %28, %cst_22 {dimension_numbers = #tpu.dot_dimension_numbers<[1], [0], [0], [1], [0, 0, 1, 1], [], []>} : vector<8x128xf32>, vector<128x128xf32>, vector<8x128xf32> -> vector<8x128xf32>
    %c0_23 = arith.constant 0 : index
    %c0_24 = arith.constant 0 : index
    %30 = vector.load %arg10[%c0_23, %c0_24] : memref<1x128xf32, #tpu.memory_space<vmem>>, vector<1x128xf32>
    %31 = vector.broadcast %30 : vector<1x128xf32> to vector<8x128xf32>
    %32 = arith.addf %29, %31 : vector<8x128xf32>
    %cst_25 = arith.constant 0.000000e+00 : f32
    %33 = vector.broadcast %cst_25 : f32 to vector<8x128xf32>
    %34 = arith.maximumf %32, %33 : vector<8x128xf32>
    %c0_26 = arith.constant 0 : index
    %c0_27 = arith.constant 0 : index
    %35 = vector.load %arg11[%c0_26, %c0_27] : memref<128x128xf32, #tpu.memory_space<vmem>>, vector<128x128xf32>
    %cst_28 = arith.constant dense<0.000000e+00> : vector<8x128xf32>
    %36 = tpu.matmul %34, %35, %cst_28 {dimension_numbers = #tpu.dot_dimension_numbers<[1], [0], [0], [1], [0, 0, 1, 1], [], []>} : vector<8x128xf32>, vector<128x128xf32>, vector<8x128xf32> -> vector<8x128xf32>
    %c0_29 = arith.constant 0 : index
    %c0_30 = arith.constant 0 : index
    %37 = vector.load %arg12[%c0_29, %c0_30] : memref<1x128xf32, #tpu.memory_space<vmem>>, vector<1x128xf32>
    %38 = vector.broadcast %37 : vector<1x128xf32> to vector<8x128xf32>
    %39 = arith.addf %36, %38 : vector<8x128xf32>
    %cst_31 = arith.constant 0.000000e+00 : f32
    %40 = vector.broadcast %cst_31 : f32 to vector<8x128xf32>
    %41 = arith.maximumf %39, %40 : vector<8x128xf32>
    %c0_32 = arith.constant 0 : index
    %c0_33 = arith.constant 0 : index
    %42 = vector.load %arg13[%c0_32, %c0_33] : memref<128x128xf32, #tpu.memory_space<vmem>>, vector<128x128xf32>
    %cst_34 = arith.constant dense<0.000000e+00> : vector<8x128xf32>
    %43 = tpu.matmul %41, %42, %cst_34 {dimension_numbers = #tpu.dot_dimension_numbers<[1], [0], [0], [1], [0, 0, 1, 1], [], []>} : vector<8x128xf32>, vector<128x128xf32>, vector<8x128xf32> -> vector<8x128xf32>
    %c0_35 = arith.constant 0 : index
    %c0_36 = arith.constant 0 : index
    %44 = vector.load %arg14[%c0_35, %c0_36] : memref<1x128xf32, #tpu.memory_space<vmem>>, vector<1x128xf32>
    %45 = vector.broadcast %44 : vector<1x128xf32> to vector<8x128xf32>
    %46 = arith.addf %43, %45 : vector<8x128xf32>
    %c0_37 = arith.constant 0 : index
    %c0_38 = arith.constant 0 : index
    %47 = vector.load %arg15[%c0_37, %c0_38] : memref<8x128xf32, #tpu.memory_space<vmem>>, vector<8x128xf32>
    tpu.vector_store %arg15[%c0_37, %c0_38], %46 {strides = array<i32>} : memref<8x128xf32, #tpu.memory_space<vmem>>, vector<8x128xf32>,
    %c0_39 = arith.constant 0 : index
    %c0_40 = arith.constant 0 : index
    %48 = vector.load %arg16[%c0_39, %c0_40] : memref<8x128xf32, #tpu.memory_space<vmem>>, vector<8x128xf32>
    tpu.vector_store %arg16[%c0_39, %c0_40], %20 {strides = array<i32>} : memref<8x128xf32, #tpu.memory_space<vmem>>, vector<8x128xf32>,
    %c0_41 = arith.constant 0 : index
    %c0_42 = arith.constant 0 : index
    %49 = vector.load %arg17[%c0_41, %c0_42] : memref<8x128xf32, #tpu.memory_space<vmem>>, vector<8x128xf32>
    tpu.vector_store %arg17[%c0_41, %c0_42], %21 {strides = array<i32>} : memref<8x128xf32, #tpu.memory_space<vmem>>, vector<8x128xf32>,
    return
  }
  func.func @transform_0(%arg0: i32) -> (i32, i32) {
    %c0_i32 = arith.constant 0 : i32
    %c0_i32_0 = arith.constant 0 : i32
    return %arg0, %c0_i32 : i32, i32
  }
  func.func @transform_1(%arg0: i32) -> (i32, i32) {
    %c0_i32 = arith.constant 0 : i32
    %c0_i32_0 = arith.constant 0 : i32
    return %arg0, %c0_i32 : i32, i32
  }
  func.func @transform_2(%arg0: i32) -> (i32, i32) {
    %c0_i32 = arith.constant 0 : i32
    %c0_i32_0 = arith.constant 0 : i32
    %c0_i32_1 = arith.constant 0 : i32
    return %c0_i32, %c0_i32_0 : i32, i32
  }
  func.func @transform_3(%arg0: i32) -> (i32, i32) {
    %c0_i32 = arith.constant 0 : i32
    %c0_i32_0 = arith.constant 0 : i32
    %c0_i32_1 = arith.constant 0 : i32
    return %c0_i32, %c0_i32_0 : i32, i32
  }
  func.func @transform_4(%arg0: i32) -> (i32, i32) {
    %c0_i32 = arith.constant 0 : i32
    %c0_i32_0 = arith.constant 0 : i32
    %c0_i32_1 = arith.constant 0 : i32
    return %c0_i32, %c0_i32_0 : i32, i32
  }
  func.func @transform_5(%arg0: i32) -> (i32, i32) {
    %c0_i32 = arith.constant 0 : i32
    %c0_i32_0 = arith.constant 0 : i32
    %c0_i32_1 = arith.constant 0 : i32
    return %c0_i32, %c0_i32_0 : i32, i32
  }
  func.func @transform_6(%arg0: i32) -> (i32, i32) {
    %c0_i32 = arith.constant 0 : i32
    %c0_i32_0 = arith.constant 0 : i32
    %c0_i32_1 = arith.constant 0 : i32
    return %c0_i32, %c0_i32_0 : i32, i32
  }
  func.func @transform_7(%arg0: i32) -> (i32, i32) {
    %c0_i32 = arith.constant 0 : i32
    %c0_i32_0 = arith.constant 0 : i32
    %c0_i32_1 = arith.constant 0 : i32
    return %c0_i32, %c0_i32_0 : i32, i32
  }
  func.func @transform_8(%arg0: i32) -> (i32, i32) {
    %c0_i32 = arith.constant 0 : i32
    %c0_i32_0 = arith.constant 0 : i32
    %c0_i32_1 = arith.constant 0 : i32
    return %c0_i32, %c0_i32_0 : i32, i32
  }
  func.func @transform_9(%arg0: i32) -> (i32, i32) {
    %c0_i32 = arith.constant 0 : i32
    %c0_i32_0 = arith.constant 0 : i32
    %c0_i32_1 = arith.constant 0 : i32
    return %c0_i32, %c0_i32_0 : i32, i32
  }
  func.func @transform_10(%arg0: i32) -> (i32, i32) {
    %c0_i32 = arith.constant 0 : i32
    %c0_i32_0 = arith.constant 0 : i32
    %c0_i32_1 = arith.constant 0 : i32
    return %c0_i32, %c0_i32_0 : i32, i32
  }
  func.func @transform_11(%arg0: i32) -> (i32, i32) {
    %c0_i32 = arith.constant 0 : i32
    %c0_i32_0 = arith.constant 0 : i32
    %c0_i32_1 = arith.constant 0 : i32
    return %c0_i32, %c0_i32_0 : i32, i32
  }
  func.func @transform_12(%arg0: i32) -> (i32, i32) {
    %c0_i32 = arith.constant 0 : i32
    %c0_i32_0 = arith.constant 0 : i32
    %c0_i32_1 = arith.constant 0 : i32
    return %c0_i32, %c0_i32_0 : i32, i32
  }
  func.func @transform_13(%arg0: i32) -> (i32, i32) {
    %c0_i32 = arith.constant 0 : i32
    %c0_i32_0 = arith.constant 0 : i32
    %c0_i32_1 = arith.constant 0 : i32
    return %c0_i32, %c0_i32_0 : i32, i32
  }
  func.func @transform_14(%arg0: i32) -> (i32, i32) {
    %c0_i32 = arith.constant 0 : i32
    %c0_i32_0 = arith.constant 0 : i32
    return %arg0, %c0_i32 : i32, i32
  }
  func.func @transform_15(%arg0: i32) -> (i32, i32) {
    %c0_i32 = arith.constant 0 : i32
    %c0_i32_0 = arith.constant 0 : i32
    return %arg0, %c0_i32 : i32, i32
  }
  func.func @transform_16(%arg0: i32) -> (i32, i32) {
    %c0_i32 = arith.constant 0 : i32
    %c0_i32_0 = arith.constant 0 : i32
    return %arg0, %c0_i32 : i32, i32
  }
}

</mosaic_0001>

<bundles_post_ra>
// kernel: tpu_custom_call.1
= control target key start
LH: loop header
LB: loop body
LE: loop exit
PB: predicated region body
PF: predicated region fallthrough
CT: control target
= control target key end

     0   :  { %s1816_s0 = inlined_call_operand.hbm [shape: f32[8,128], index: 0, kind: input, shape index: {}]   ;;  %s1817_s1 = inlined_call_operand.hbm [shape: f32[8,128], index: 1, kind: input, shape index: {}]   ;;  %s1818_s2 = inlined_call_operand.hbm [shape: f32[128,128], index: 2, kind: input, shape index: {}]   ;;  %s1819_s3 = inlined_call_operand.vmem [shape: f32[1,128], index: 3, kind: input, shape index: {}]   ;;  %s1820_s4 = inlined_call_operand.hbm [shape: f32[128,128], index: 4, kind: input, shape index: {}]   ;;  %s1821_s5 = inlined_call_operand.vmem [shape: f32[1,128], index: 5, kind: input, shape index: {}]   ;;  %s1822_s6 = inlined_call_operand.hbm [shape: f32[128,256], index: 6, kind: input, shape index: {}]   ;;  %s1823_s7 = inlined_call_operand.vmem [shape: f32[1,256], index: 7, kind: input, shape index: {}]   ;;  %s1824_s8 = inlined_call_operand.hbm [shape: f32[128,128], index: 8, kind: input, shape index: {}]   ;;  %s1825_s9 = inlined_call_operand.vmem [shape: f32[1,128], index: 9, kind: input, shape index: {}]   ;;  %s1826_s10 = inlined_call_operand.hbm [shape: f32[128,128], index: 10, kind: input, shape index: {}]   ;;  %s1827_s11 = inlined_call_operand.vmem [shape: f32[1,128], index: 11, kind: input, shape index: {}]   ;;  %s1828_s12 = inlined_call_operand.hbm [shape: f32[128,128], index: 12, kind: input, shape index: {}]   ;;  %s1829_s13 = inlined_call_operand.vmem [shape: f32[1,128], index: 13, kind: input, shape index: {}]   ;;  %s1830_s14 = inlined_call_operand.hbm [shape: f32[8,128], index: 14, kind: output, shape index: {0}]   ;;  %s1831_s15 = inlined_call_operand.hbm [shape: f32[8,128], index: 15, kind: output, shape index: {1}]   ;;  %s1832_s16 = inlined_call_operand.hbm [shape: f32[8,128], index: 16, kind: output, shape index: {2}]  }
   0x1   :  { %1834 = sst [smem:[#allocation27_spill]] %s1816_s0 }
   0x2   :  { %22 = vsyncpa [#allocation3], 0 }
   0x3   :  { %23 = vsyncpa [#allocation6], 0 }
   0x4   :  { %24 = vsyncpa [#allocation9], 0 }
   0x5   :  { %25 = vsyncpa [#allocation12], 0 }
   0x6   :  { %26 = vsyncpa [#allocation15], 0 }
   0x7   :  { %27 = vsyncpa [#allocation4], 0 }
   0x8   :  { %28 = vsyncpa [#allocation18], 0  ;;  %s1490_s21 = smov [#allocation5]   ;;  %s1234_s25 = scalar_lea.hbm %s1817_s1, 128 }
   0x9   :  { %s45_s22 = sshll.u32 %s1490_s21, 4  ;;  %p1235_p0 = scmp.ne.s32.totalorder %s1817_s1, %s1234_s25  ;;  %s46_s22 = int_to_ptr.vmem [resolvable:$true] %s45_s22 }
   0xa   :  { %p1238_p1 = scmp.lt.u32.totalorder %s1234_s25, %s1817_s1 }
   0xc   :  { %p1240_p2 = pnand %p1238_p1, %p1235_p0 }
   0xe   :  { %1243 = shalt.err (!%p1240_p2)
}
   0xf   :  { %s1244_s30 = scalar_lea.vmem %s46_s22, 128  ;;  %p1249_p4 = scmp.lt.s32.totalorder %s46_s22, %s46_s22 }
  0x10   :  { %p1245_p3 = scmp.ne.s32.totalorder %s46_s22, %s1244_s30  ;;  %p1250_p5 = scmp.lt.s32.totalorder %s1244_s30, %s1244_s30 }
  0x12   :  { %p1251_p6 = por %p1250_p5, %p1249_p4 }
  0x14   :  { %p1252_p7 = pnand %p1251_p6, %p1245_p3 }
  0x16   :  { %1255 = shalt.err (!%p1252_p7)
}
  0x17   :  { %48 = dma.hbm_to_vmem [thread:$0]  %s1817_s1, 128, %s46_s22, [#allocation6]  }
  0x18   :  { %s1491_s18 = smov [#allocation8]   ;;  %s1492_s20 = smov [#allocation11]  }
  0x19   :  { %s68_s19 = sshll.u32 %s1491_s18, 4  ;;  %s96_s21 = sshll.u32 %s1492_s20, 4  ;;  %s69_s19 = int_to_ptr.vmem [resolvable:$true] %s68_s19  ;;  %s97_s21 = int_to_ptr.vmem [resolvable:$true] %s96_s21 }
  0x1a   :  { %s1256_s25 = scalar_lea.hbm %s1820_s4, 2048 }
  0x1b   :  { %p1257_p8 = scmp.ne.s32.totalorder %s1820_s4, %s1256_s25  ;;  %p1260_p9 = scmp.lt.u32.totalorder %s1256_s25, %s1820_s4 }
  0x1d   :  { %p1262_p10 = pnand %p1260_p9, %p1257_p8 }
  0x1f   :  { %1265 = shalt.err (!%p1262_p10)
}
  0x20   :  { %s1266_s1 = scalar_lea.vmem %s69_s19, 2048  ;;  %p1271_p12 = scmp.lt.s32.totalorder %s69_s19, %s69_s19 }
  0x21   :  { %p1267_p11 = scmp.ne.s32.totalorder %s69_s19, %s1266_s1  ;;  %p1272_p13 = scmp.lt.s32.totalorder %s1266_s1, %s1266_s1 }
  0x23   :  { %p1273_p0 = por %p1272_p13, %p1271_p12 }
  0x25   :  { %p1274_p1 = pnand %p1273_p0, %p1267_p11 }
  0x27   :  { %1277 = shalt.err (!%p1274_p1)
}
  0x28   :  { %s1493_s22 = smov 128   ;;  %s1494_s30 = smov 8  }
  0x29   :  { %74 = dma.hbm_to_vmem [thread:$0]  %s1820_s4, 2048, %s69_s19, [#allocation9], %s1493_s22, %s1493_s22, %s1494_s30  }
  0x2a   :  { %s1278_s23 = scalar_lea.hbm %s1824_s8, 2048 }
  0x2b   :  { %p1279_p2 = scmp.ne.s32.totalorder %s1824_s8, %s1278_s23  ;;  %p1282_p3 = scmp.lt.u32.totalorder %s1278_s23, %s1824_s8 }
  0x2d   :  { %p1284_p4 = pnand %p1282_p3, %p1279_p2 }
  0x2f   :  { %1287 = shalt.err (!%p1284_p4)
}
  0x30   :  { %s1288_s28 = scalar_lea.vmem %s97_s21, 2048  ;;  %p1293_p6 = scmp.lt.s32.totalorder %s97_s21, %s97_s21 }
  0x31   :  { %p1289_p5 = scmp.ne.s32.totalorder %s97_s21, %s1288_s28  ;;  %p1294_p7 = scmp.lt.s32.totalorder %s1288_s28, %s1288_s28 }
  0x33   :  { %p1295_p8 = por %p1294_p7, %p1293_p6 }
  0x35   :  { %p1296_p9 = pnand %p1295_p8, %p1289_p5 }
  0x37   :  { %1299 = shalt.err (!%p1296_p9)
}
  0x38   :  { %102 = dma.hbm_to_vmem [thread:$0]  %s1824_s8, 2048, %s97_s21, [#allocation12], %s1493_s22, %s1493_s22, %s1494_s30  }
  0x39   :  { %s1495_s29 = smov [#allocation2]   ;;  %s1496_s0 = smov [#allocation7]  }
  0x3a   :  { %s35_s1 = sshll.u32 %s1495_s29, 4  ;;  %s54_s17 = sshll.u32 %s1496_s0, 4  ;;  %s36_s1 = int_to_ptr.vmem [resolvable:$true] %s35_s1  ;;  %s55_s17 = int_to_ptr.vmem [resolvable:$true] %s54_s17 }
  0x3b   :  { %s1835_s23 = sld [smem:[#allocation27_spill]] }
  0x41   :  { %s1300_s24 = scalar_lea.hbm %s1835_s23, 128 }
  0x42   :  { %p1301_p10 = scmp.ne.s32.totalorder %s1835_s23, %s1300_s24  ;;  %p1304_p11 = scmp.lt.u32.totalorder %s1300_s24, %s1835_s23 }
  0x44   :  { %p1306_p12 = pnand %p1304_p11, %p1301_p10 }
  0x46   :  { %1309 = shalt.err (!%p1306_p12)
}
  0x47   :  { %s1310_s8 = scalar_lea.vmem %s36_s1, 128  ;;  %p1315_p0 = scmp.lt.s32.totalorder %s36_s1, %s36_s1 }
  0x48   :  { %p1311_p13 = scmp.ne.s32.totalorder %s36_s1, %s1310_s8  ;;  %p1316_p1 = scmp.lt.s32.totalorder %s1310_s8, %s1310_s8 }
  0x4a   :  { %p1317_p2 = por %p1316_p1, %p1315_p0 }
  0x4c   :  { %p1318_p3 = pnand %p1317_p2, %p1311_p13 }
  0x4e   :  { %1321 = shalt.err (!%p1318_p3)
}
  0x4f   :  { %38 = dma.hbm_to_vmem [thread:$0]  %s1835_s23, 128, %s36_s1, [#allocation3]  }
  0x50   :  { %s1322_s0 = scalar_lea.hbm %s1818_s2, 2048 }
  0x51   :  { %p1323_p4 = scmp.ne.s32.totalorder %s1818_s2, %s1322_s0  ;;  %p1326_p5 = scmp.lt.u32.totalorder %s1322_s0, %s1818_s2 }
  0x53   :  { %p1328_p6 = pnand %p1326_p5, %p1323_p4 }
  0x55   :  { %1331 = shalt.err (!%p1328_p6)
}
  0x56   :  { %s1332_s26 = scalar_lea.vmem %s55_s17, 2048  ;;  %p1337_p8 = scmp.lt.s32.totalorder %s55_s17, %s55_s17 }
  0x57   :  { %p1333_p7 = scmp.ne.s32.totalorder %s55_s17, %s1332_s26  ;;  %p1338_p9 = scmp.lt.s32.totalorder %s1332_s26, %s1332_s26 }
  0x59   :  { %p1339_p10 = por %p1338_p9, %p1337_p8 }
  0x5b   :  { %p1340_p11 = pnand %p1339_p10, %p1333_p7 }
  0x5d   :  { %1343 = shalt.err (!%p1340_p11)
}
  0x5e   :  { %60 = dma.hbm_to_vmem [thread:$0]  %s1818_s2, 2048, %s55_s17, [#allocation6], %s1493_s22, %s1493_s22, %s1494_s30  }
  0x5f   :  { %s1497_s27 = smov [#allocation10]   ;;  %s1344_s4 = scalar_lea.hbm %s1822_s6, 4096 }
  0x60   :  { %s82_s28 = sshll.u32 %s1497_s27, 4  ;;  %p1345_p12 = scmp.ne.s32.totalorder %s1822_s6, %s1344_s4  ;;  %s83_s28 = int_to_ptr.vmem [resolvable:$true] %s82_s28 }
  0x61   :  { %p1348_p13 = scmp.lt.u32.totalorder %s1344_s4, %s1822_s6 }
  0x63   :  { %p1350_p0 = pnand %p1348_p13, %p1345_p12 }
  0x65   :  { %1353 = shalt.err (!%p1350_p0)
}
  0x66   :  { %s1354_s20 = scalar_lea.vmem %s83_s28, 4096  ;;  %p1359_p2 = scmp.lt.s32.totalorder %s83_s28, %s83_s28 }
  0x67   :  { %p1355_p1 = scmp.ne.s32.totalorder %s83_s28, %s1354_s20  ;;  %p1360_p3 = scmp.lt.s32.totalorder %s1354_s20, %s1354_s20 }
  0x69   :  { %p1361_p4 = por %p1360_p3, %p1359_p2 }
  0x6b   :  { %p1362_p5 = pnand %p1361_p4, %p1355_p1 }
  0x6d   :  { %1365 = shalt.err (!%p1362_p5)
}
  0x6e   :  { %s1498_s2 = smov 256   ;;  %s1499_s17 = smov 16  }
  0x6f   :  { %88 = dma.hbm_to_vmem [thread:$0]  %s1822_s6, 4096, %s83_s28, [#allocation9], %s1498_s2, %s1498_s2, %s1499_s17  }
  0x70   :  { %s1500_s26 = smov [#allocation13]   ;;  %s1501_s23 = smov [#allocation14]  }
  0x71   :  { %s110_s1 = sshll.u32 %s1500_s26, 4  ;;  %s124_s27 = sshll.u32 %s1501_s23, 4  ;;  %s111_s1 = int_to_ptr.vmem [resolvable:$true] %s110_s1  ;;  %s1674_s27 = int_to_ptr.vmem [resolvable:$true] %s124_s27 }
  0x72   :  { %s1366_s4 = scalar_lea.hbm %s1826_s10, 2048 }
  0x73   :  { %p1367_p6 = scmp.ne.s32.totalorder %s1826_s10, %s1366_s4  ;;  %p1370_p7 = scmp.lt.u32.totalorder %s1366_s4, %s1826_s10 }
  0x75   :  { %p1372_p8 = pnand %p1370_p7, %p1367_p6 }
  0x77   :  { %1375 = shalt.err (!%p1372_p8)
}
  0x78   :  { %s1376_s6 = scalar_lea.vmem %s111_s1, 2048  ;;  %p1381_p10 = scmp.lt.s32.totalorder %s111_s1, %s111_s1 }
  0x79   :  { %p1377_p9 = scmp.ne.s32.totalorder %s111_s1, %s1376_s6  ;;  %p1382_p11 = scmp.lt.s32.totalorder %s1376_s6, %s1376_s6 }
  0x7b   :  { %p1383_p12 = por %p1382_p11, %p1381_p10 }
  0x7d   :  { %p1384_p13 = pnand %p1383_p12, %p1377_p9 }
  0x7f   :  { %1387 = shalt.err (!%p1384_p13)
}
  0x80   :  { %116 = dma.hbm_to_vmem [thread:$0]  %s1826_s10, 2048, %s111_s1, [#allocation12], %s1493_s22, %s1493_s22, %s1494_s30  }
  0x81   :  { %s1388_s24 = scalar_lea.hbm %s1828_s12, 2048 }
  0x82   :  { %p1389_p0 = scmp.ne.s32.totalorder %s1828_s12, %s1388_s24  ;;  %p1392_p1 = scmp.lt.u32.totalorder %s1388_s24, %s1828_s12 }
  0x84   :  { %p1394_p2 = pnand %p1392_p1, %p1389_p0 }
  0x86   :  { %1397 = shalt.err (!%p1394_p2)
}
  0x87   :  { %s1398_s21 = scalar_lea.vmem %s1674_s27, 2048  ;;  %p1403_p4 = scmp.lt.s32.totalorder %s1674_s27, %s1674_s27 }
  0x88   :  { %p1399_p3 = scmp.ne.s32.totalorder %s1674_s27, %s1398_s21  ;;  %p1404_p5 = scmp.lt.s32.totalorder %s1398_s21, %s1398_s21 }
  0x8a   :  { %p1405_p6 = por %p1404_p5, %p1403_p4 }
  0x8c   :  { %p1406_p7 = pnand %p1405_p6, %p1399_p3 }
  0x8e   :  { %1409 = shalt.err (!%p1406_p7)
}
  0x8f   :  { %130 = dma.hbm_to_vmem [thread:$0]  %s1828_s12, 2048, %s1674_s27, [#allocation15], %s1493_s22, %s1493_s22, %s1494_s30  }
  0x90   :  { %1476 = dma.done.wait [#allocation3], 128  }
  0x91   :  { %1477 = vsyncadd [#allocation3], 4294967168 }
  0x92   :  { %1478 = dma.done.wait [#allocation6], 2176  }
  0x93   :  { %1479 = vsyncadd [#allocation6], 4294965120 }
  0x94   :  { %1480 = dma.done.wait [#allocation9], 6144  }
  0x95   :  { %1481 = vsyncadd [#allocation9], 4294961152 }
  0x96   :  { %1482 = dma.done.wait [#allocation12], 4096  }
  0x97   :  { %1483 = vsyncadd [#allocation12], 4294963200 }
  0x98   :  { %1484 = dma.done.wait [#allocation15], 2048  }
  0x99   :  { %1485 = vsyncadd [#allocation15], 4294965248  ;;  %v1502_v0 = vmov 0.0|0.0   ;;  %vm1503_vm0 = vmmov 0   ;;  %v1504_v1 = vmov 0.0   ;;  %v158_v2 = vld [vmem:[#allocation7] sm:$0xff] }
  0x9a   :  { %1062 = vmatprep.subr.bf16.mxu0 %v1502_v0  ;;  %919 = vmatprep.mubr.msk.f32.mxu0 %vm1503_vm0, %v1504_v1  ;;  %v159_v3 = vld [vmem:[#allocation7 + $0x8] sm:$0xff]  ;;  %v160_v4 = vld [vmem:[#allocation7 + $0x10] sm:$0xff]  ;;  %v161_v6 = vld [vmem:[#allocation7 + $0x18] sm:$0xff]  ;;  %s1505_s0 = smov [#allocation17]  }
  0x9b   :  { %1086 = vmatprep.subr.bf16.mxu1 %v1502_v0  ;;  %954 = vmatprep.mubr.msk.f32.mxu1 %vm1503_vm0, %v1504_v1  ;;  %v1063_v5 = vpack.c.bf16 %v159_v3, %v158_v2  ;;  %v1066_v7 = vpack.c.bf16 %v161_v6, %v160_v4  ;;  %v162_v8 = vld [vmem:[#allocation7 + $0x20] sm:$0xff]  ;;  %v163_v9 = vld [vmem:[#allocation7 + $0x28] sm:$0xff]  ;;  %v254_v12 = vld [vmem:[#allocation8 + $0x10] sm:$0xff] }
  0x9c   :  { %v252_v10 = vld [vmem:[#allocation8] sm:$0xff]  ;;  %v253_v11 = vld [vmem:[#allocation8 + $0x8] sm:$0xff]  ;;  %v255_v13 = vld [vmem:[#allocation8 + $0x18] sm:$0xff]  ;;  %v1069_v14 = vpack.c.bf16 %v163_v9, %v162_v8 }
  0x9d   :  { %1064 = vmatpush3.bf16.msra.mxu0 %v1063_v5  ;;  %v1087_v15 = vpack.c.bf16 %v253_v11, %v252_v10  ;;  %v164_v16 = vld [vmem:[#allocation7 + $0x30] sm:$0xff]  ;;  %v165_v17 = vld [vmem:[#allocation7 + $0x38] sm:$0xff]  ;;  %v1090_v18 = vpack.c.bf16 %v255_v13, %v254_v12  ;;  %v256_v19 = vld [vmem:[#allocation8 + $0x20] sm:$0xff] }
  0x9e   :  { %1065 = vmatprep.subr.bf16.mxu0 %v1502_v0  ;;  %v257_v20 = vld [vmem:[#allocation8 + $0x28] sm:$0xff]  ;;  %v1072_v21 = vpack.c.bf16 %v165_v17, %v164_v16  ;;  %v166_v22 = vld [vmem:[#allocation7 + $0x40] sm:$0xff]  ;;  %v258_v25 = vld [vmem:[#allocation8 + $0x30] sm:$0xff] }
  0x9f   :  { %1088 = vmatpush3.bf16.msra.mxu1 %v1087_v15  ;;  %v167_v23 = vld [vmem:[#allocation7 + $0x48] sm:$0xff]  ;;  %v1093_v24 = vpack.c.bf16 %v257_v20, %v256_v19  ;;  %v259_v26 = vld [vmem:[#allocation8 + $0x38] sm:$0xff]  ;;  %v168_v28 = vld [vmem:[#allocation7 + $0x50] sm:$0xff] }
  0xa0   :  { %1089 = vmatprep.subr.bf16.mxu1 %v1502_v0  ;;  %v1075_v27 = vpack.c.bf16 %v167_v23, %v166_v22  ;;  %v169_v29 = vld [vmem:[#allocation7 + $0x58] sm:$0xff]  ;;  %v1096_v30 = vpack.c.bf16 %v259_v26, %v258_v25  ;;  %v260_v31 = vld [vmem:[#allocation8 + $0x40] sm:$0xff]  ;;  %v261_v32 = vld [vmem:[#allocation8 + $0x48] sm:$0xff] }
  0xa1   :  { %1067 = vmatpush3.bf16.msra.mxu0 %v1066_v7  ;;  %v1078_v33 = vpack.c.bf16 %v169_v29, %v168_v28  ;;  %v170_v34 = vld [vmem:[#allocation7 + $0x60] sm:$0xff]  ;;  %v171_v35 = vld [vmem:[#allocation7 + $0x68] sm:$0xff]  ;;  %v1099_v36 = vpack.c.bf16 %v261_v32, %v260_v31  ;;  %v262_v37 = vld [vmem:[#allocation8 + $0x50] sm:$0xff] }
  0xa2   :  { %1068 = vmatprep.subr.bf16.mxu0 %v1502_v0  ;;  %v263_v38 = vld [vmem:[#allocation8 + $0x58] sm:$0xff]  ;;  %v1081_v39 = vpack.c.bf16 %v171_v35, %v170_v34  ;;  %v172_v40 = vld [vmem:[#allocation7 + $0x70] sm:$0xff]  ;;  %v264_v43 = vld [vmem:[#allocation8 + $0x60] sm:$0xff] }
  0xa3   :  { %1091 = vmatpush3.bf16.msra.mxu1 %v1090_v18  ;;  %v173_v41 = vld [vmem:[#allocation7 + $0x78] sm:$0xff]  ;;  %v1102_v42 = vpack.c.bf16 %v263_v38, %v262_v37  ;;  %v265_v44 = vld [vmem:[#allocation8 + $0x68] sm:$0xff]  ;;  %v157_v47 = vld [vmem:[#allocation2] sm:$0xff] }
  0xa4   :  { %1092 = vmatprep.subr.bf16.mxu1 %v1502_v0  ;;  %v1084_v45 = vpack.c.bf16 %v173_v41, %v172_v40  ;;  %v1105_v46 = vpack.c.bf16 %v265_v44, %v264_v43  ;;  %v266_v48 = vld [vmem:[#allocation8 + $0x70] sm:$0xff]  ;;  %v267_v49 = vld [vmem:[#allocation8 + $0x78] sm:$0xff]  ;;  %v347_v51 = vld [vmem:[#allocation10 + $0x8] sm:$0xff] }
  0xa5   :  { %1070 = vmatpush3.bf16.msra.mxu0 %v1069_v14  ;;  %v1108_v50 = vpack.c.bf16 %v267_v49, %v266_v48  ;;  %v349_v52 = vld [vmem:[#allocation10 + $0x18] sm:$0xff]  ;;  %v346_v53 = vld [vmem:[#allocation10] sm:$0xff]  ;;  %v348_v55 = vld [vmem:[#allocation10 + $0x10] sm:$0xff] }
  0xa6   :  { %1071 = vmatprep.subr.bf16.mxu0 %v1502_v0  ;;  %v1110_v54 = vpack.c.bf16 %v349_v52, %v347_v51  ;;  %v351_v56 = vld [vmem:[#allocation10 + $0x28] sm:$0xff]  ;;  %v353_v57 = vld [vmem:[#allocation10 + $0x38] sm:$0xff]  ;;  %v1112_v58 = vpack.c.bf16 %v348_v55, %v346_v53  ;;  %v350_v60 = vld [vmem:[#allocation10 + $0x20] sm:$0xff] }
  0xa7   :  { %1094 = vmatpush3.bf16.msra.mxu1 %v1093_v24  ;;  %v1114_v59 = vpack.c.bf16 %v353_v57, %v351_v56  ;;  %v352_v61 = vld [vmem:[#allocation10 + $0x30] sm:$0xff]  ;;  %v355_v62 = vld [vmem:[#allocation10 + $0x48] sm:$0xff]  ;;  %v357_v63 = vld [vmem:[#allocation10 + $0x58] sm:$0xff] }
  0xa8   :  { %1095 = vmatprep.subr.bf16.mxu1 %v1502_v0  ;;  %v1116_v2 = vpack.c.bf16 %v352_v61, %v350_v60  ;;  %v1118_v3 = vpack.c.bf16 %v357_v63, %v355_v62  ;;  %v354_v4 = vld [vmem:[#allocation10 + $0x40] sm:$0xff]  ;;  %v356_v5 = vld [vmem:[#allocation10 + $0x50] sm:$0xff]  ;;  %v359_v6 = vld [vmem:[#allocation10 + $0x68] sm:$0xff] }
  0xa9   :  { %1073 = vmatpush3.bf16.msra.mxu0 %v1072_v21  ;;  %v361_v7 = vld [vmem:[#allocation10 + $0x78] sm:$0xff]  ;;  %v1120_v8 = vpack.c.bf16 %v356_v5, %v354_v4  ;;  %v358_v10 = vld [vmem:[#allocation10 + $0x60] sm:$0xff]  ;;  %v360_v11 = vld [vmem:[#allocation10 + $0x70] sm:$0xff] }
  0xaa   :  { %1074 = vmatprep.subr.bf16.mxu0 %v1502_v0  ;;  %v1122_v9 = vpack.c.bf16 %v361_v7, %v359_v6  ;;  %v363_v12 = vld [vmem:[#allocation10 + $0x88] sm:$0xff]  ;;  %v365_v13 = vld [vmem:[#allocation10 + $0x98] sm:$0xff]  ;;  %v1124_v14 = vpack.c.bf16 %v360_v11, %v358_v10  ;;  %v362_v16 = vld [vmem:[#allocation10 + $0x80] sm:$0xff] }
  0xab   :  { %1097 = vmatpush3.bf16.msra.mxu1 %v1096_v30  ;;  %v1126_v15 = vpack.c.bf16 %v365_v13, %v363_v12  ;;  %v364_v17 = vld [vmem:[#allocation10 + $0x90] sm:$0xff]  ;;  %v367_v18 = vld [vmem:[#allocation10 + $0xa8] sm:$0xff]  ;;  %v369_v19 = vld [vmem:[#allocation10 + $0xb8] sm:$0xff] }
  0xac   :  { %1098 = vmatprep.subr.bf16.mxu1 %v1502_v0  ;;  %v1128_v20 = vpack.c.bf16 %v364_v17, %v362_v16  ;;  %v1130_v21 = vpack.c.bf16 %v369_v19, %v367_v18  ;;  %v366_v22 = vld [vmem:[#allocation10 + $0xa0] sm:$0xff]  ;;  %v368_v23 = vld [vmem:[#allocation10 + $0xb0] sm:$0xff]  ;;  %v371_v24 = vld [vmem:[#allocation10 + $0xc8] sm:$0xff] }
  0xad   :  { %1076 = vmatpush3.bf16.msra.mxu0 %v1075_v27  ;;  %v373_v25 = vld [vmem:[#allocation10 + $0xd8] sm:$0xff]  ;;  %v1132_v26 = vpack.c.bf16 %v368_v23, %v366_v22  ;;  %v370_v28 = vld [vmem:[#allocation10 + $0xc0] sm:$0xff]  ;;  %v372_v29 = vld [vmem:[#allocation10 + $0xd0] sm:$0xff] }
  0xae   :  { %1077 = vmatprep.subr.bf16.mxu0 %v1502_v0  ;;  %v1134_v27 = vpack.c.bf16 %v373_v25, %v371_v24  ;;  %v1136_v30 = vpack.c.bf16 %v372_v29, %v370_v28  ;;  %v797_v31 = vld [vmem:[%s1819_s3] ss:$0 sm:$0xff]  ;;  %v377_v37 = vld [vmem:[#allocation10 + $0xf8] sm:$0xff]  ;;  %v468_v43 = vld [vmem:[#allocation11 + $0x8] sm:$0xff] }
  0xaf   :  { %1100 = vmatpush3.bf16.msra.mxu1 %v1099_v36  ;;  %v375_v36 = vld [vmem:[#allocation10 + $0xe8] sm:$0xff]  ;;  %v376_v40 = vld [vmem:[#allocation10 + $0xf0] sm:$0xff]  ;;  %v471_v53 = vld [vmem:[#allocation11 + $0x20] sm:$0xff] }
  0xb0   :  { %1101 = vmatprep.subr.bf16.mxu1 %v1502_v0  ;;  %v1138_v38 = vpack.c.bf16 %v377_v37, %v375_v36  ;;  %v469_v44 = vld [vmem:[#allocation11 + $0x10] sm:$0xff]  ;;  %v474_v57 = vld [vmem:[#allocation11 + $0x38] sm:$0xff]  ;;  %v476_v60 = vld [vmem:[#allocation11 + $0x48] sm:$0xff] }
  0xb1   :  { %1079 = vmatpush3.bf16.msra.mxu0 %v1078_v33  ;;  %v798_v48 = vld [vmem:[%s1821_s5] ss:$0 sm:$0xff]  ;;  %v478_v63 = vld [vmem:[#allocation11 + $0x58] sm:$0xff]  ;;  %v480_v4 = vld [vmem:[#allocation11 + $0x68] sm:$0xff] }
  0xb2   :  { %1080 = vmatprep.subr.bf16.mxu0 %v1502_v0  ;;  %v473_v56 = vld [vmem:[#allocation11 + $0x30] sm:$0xff]  ;;  %v482_v7 = vld [vmem:[#allocation11 + $0x78] sm:$0xff]  ;;  %v562_v10 = vld [vmem:[#allocation13 + $0x8] sm:$0xff] }
  0xb3   :  { %1103 = vmatpush3.bf16.msra.mxu1 %v1102_v42  ;;  %v467_v42 = vld [vmem:[#allocation11] sm:$0xff]  ;;  %v477_v62 = vld [vmem:[#allocation11 + $0x50] sm:$0xff]  ;;  %v564_v13 = vld [vmem:[#allocation13 + $0x18] sm:$0xff] }
  0xb4   :  { %1104 = vmatprep.subr.bf16.mxu1 %v1502_v0  ;;  %v481_v6 = vld [vmem:[#allocation11 + $0x70] sm:$0xff]  ;;  %v566_v16 = vld [vmem:[#allocation13 + $0x28] sm:$0xff]  ;;  %v568_v19 = vld [vmem:[#allocation13 + $0x38] sm:$0xff] }
  0xb5   :  { %1082 = vmatpush3.bf16.msra.mxu0 %v1081_v39  ;;  %v374_v39 = vld [vmem:[#allocation10 + $0xe0] sm:$0xff]  ;;  %v563_v11 = vld [vmem:[#allocation13 + $0x10] sm:$0xff]  ;;  %v570_v22 = vld [vmem:[#allocation13 + $0x48] sm:$0xff] }
  0xb6   :  { %1083 = vmatprep.subr.bf16.mxu0 %v1502_v0  ;;  %v1140_v41 = vpack.c.bf16 %v376_v40, %v374_v39  ;;  %v567_v18 = vld [vmem:[#allocation13 + $0x30] sm:$0xff]  ;;  %v572_v25 = vld [vmem:[#allocation13 + $0x58] sm:$0xff]  ;;  %v574_v28 = vld [vmem:[#allocation13 + $0x68] sm:$0xff] }
  0xb7   :  { %1106 = vmatpush3.bf16.msra.mxu1 %v1105_v46  ;;  %v470_v46 = vld [vmem:[#allocation11 + $0x18] sm:$0xff]  ;;  %v571_v24 = vld [vmem:[#allocation13 + $0x50] sm:$0xff] }
  0xb8   :  { %1107 = vmatprep.subr.bf16.mxu1 %v1502_v0 }
  0xb9   :  { %1085 = vmatpush3.bf16.msra.mxu0 %v1084_v45  ;;  %v1143_v45 = vpack.c.bf16 %v468_v43, %v467_v42  ;;  %v461_v43 = vld [vmem:[#allocation5] sm:$0xff] }
  0xba   :  { %1111 = vmatprep.subr.bf16.mxu0 %v1110_v54  ;;  %v472_v54 = vld [vmem:[#allocation11 + $0x28] sm:$0xff] }
  0xbb   :  { %1109 = vmatpush3.bf16.msra.mxu1 %v1108_v50  ;;  %v1149_v55 = vpack.c.bf16 %v472_v54, %v471_v53  ;;  %v658_v54 = vld [vmem:[#allocation14 + $0x18] sm:$0xff] }
  0xbc   :  { %920 = vmatmul.mubr.f32.vlgmr.msra.gmra.mrb[0].mxu0 %v157_v47  ;;  %1142 = vmatprep.subr.bf16.mxu1 %v1502_v0  ;;  %v1146_v47 = vpack.c.bf16 %v470_v46, %v469_v44 }
  0xbd   :  { %454 = vmatprep.mubr.f32.mxu0 %v1504_v1  ;;  %1113 = vmatpush1.bf16.msra.mxu0 %v1112_v58  ;;  %v1152_v58 = vpack.c.bf16 %v474_v57, %v473_v56  ;;  %v659_v56 = vld [vmem:[#allocation14 + $0x20] sm:$0xff]  ;;  %v660_v57 = vld [vmem:[#allocation14 + $0x28] sm:$0xff] }
  0xbe   :  { %1115 = vmatprep.subr.bf16.mxu0 %v1114_v59  ;;  %v475_v59 = vld [vmem:[#allocation11 + $0x40] sm:$0xff] }
  0xbf   :  { %v1155_v61 = vpack.c.bf16 %v476_v60, %v475_v59  ;;  %v662_v59 = vld [vmem:[#allocation14 + $0x38] sm:$0xff] }
  0xc1   :  { %1117 = vmatpush1.bf16.msra.mxu0 %v1116_v2  ;;  %v1158_v2 = vpack.c.bf16 %v478_v63, %v477_v62  ;;  %v664_v62 = vld [vmem:[#allocation14 + $0x48] sm:$0xff] }
  0xc2   :  { %1119 = vmatprep.subr.bf16.mxu0 %v1118_v3  ;;  %v479_v3 = vld [vmem:[#allocation11 + $0x60] sm:$0xff] }
  0xc3   :  { %v1161_v5 = vpack.c.bf16 %v480_v4, %v479_v3  ;;  %v666_v3 = vld [vmem:[#allocation14 + $0x58] sm:$0xff] }
  0xc5   :  { %1121 = vmatpush1.bf16.msra.mxu0 %v1120_v8  ;;  %v1164_v8 = vpack.c.bf16 %v482_v7, %v481_v6  ;;  %v668_v6 = vld [vmem:[#allocation14 + $0x68] sm:$0xff] }
  0xc6   :  { %1123 = vmatprep.subr.bf16.mxu0 %v1122_v9  ;;  %v561_v9 = vld [vmem:[#allocation13] sm:$0xff] }
  0xc7   :  { %v1167_v12 = vpack.c.bf16 %v562_v10, %v561_v9 }
  0xc9   :  { %1125 = vmatpush1.bf16.msra.mxu0 %v1124_v14  ;;  %v1170_v14 = vpack.c.bf16 %v564_v13, %v563_v11  ;;  %v669_v13 = vld [vmem:[#allocation14 + $0x70] sm:$0xff] }
  0xca   :  { %1127 = vmatprep.subr.bf16.mxu0 %v1126_v15  ;;  %v565_v15 = vld [vmem:[#allocation13 + $0x20] sm:$0xff] }
  0xcb   :  { %v1173_v17 = vpack.c.bf16 %v566_v16, %v565_v15  ;;  %v800_v16 = vld [vmem:[%s1827_s11] ss:$0 sm:$0xff] }
  0xcd   :  { %1129 = vmatpush1.bf16.msra.mxu0 %v1128_v20  ;;  %v1176_v20 = vpack.c.bf16 %v568_v19, %v567_v18 }
  0xce   :  { %1131 = vmatprep.subr.bf16.mxu0 %v1130_v21  ;;  %v569_v21 = vld [vmem:[#allocation13 + $0x40] sm:$0xff] }
  0xcf   :  { %v1179_v23 = vpack.c.bf16 %v570_v22, %v569_v21 }
  0xd1   :  { %1133 = vmatpush1.bf16.msra.mxu0 %v1132_v26  ;;  %v1182_v26 = vpack.c.bf16 %v572_v25, %v571_v24 }
  0xd2   :  { %1135 = vmatprep.subr.bf16.mxu0 %v1134_v27  ;;  %v573_v27 = vld [vmem:[#allocation13 + $0x60] sm:$0xff] }
  0xd3   :  { %v1185_v29 = vpack.c.bf16 %v574_v28, %v573_v27 }
  0xd5   :  { %1137 = vmatpush1.bf16.msra.mxu0 %v1136_v30  ;;  %v380_v30 = vlaneseq }
  0xd6   :  { %1139 = vmatprep.subr.bf16.mxu0 %v1138_v38 }
  0xd9   :  { %1141 = vmatpush1.bf16.msra.mxu0 %v1140_v41 }
  0xda   :  { %1166 = vmatprep.subr.bf16.mxu0 %v1502_v0 }
 0x18f   :  { %v247_v32 = vpop.f32.mrb[0].mxu0 }
 0x190   :  { %v248_v33 = vadd.f32 %v797_v31, %v247_v32  ;;  %v921_v34 = vpop.f32.mrb[1].mxu0  ;;  %v381_v31 = vshrl.u32 %v380_v30, 7 }
 0x192   :  { %v251_v35 = vmax.f32 %v248_v33, 0.0  ;;  %v382_v32 = vsub.s32 0, %v381_v31  ;;  %v378_v33 = vld [vmem:[%s1823_s7] sm:$0x3]  ;;  %v386_v34 = vsub.s32 1, %v381_v31 }
 0x194   :  { %955 = vmatmul.mubr.f32.vlgmr.msra.gmra.mrb[0].mxu1 %v251_v35  ;;  %v383_v35 = vrot.slane %v378_v33, %v382_v32  ;;  %v387_v36 = vrot.slane %v378_v33, %v386_v34 }
 0x195   :  { %989 = vmatprep.mubr.msk.f32.mxu1 %vm1503_vm0, %v1504_v1  ;;  %1144 = vmatpush3.bf16.msra.mxu1 %v1143_v45 }
 0x196   :  { %1145 = vmatprep.subr.bf16.mxu1 %v1502_v0 }
 0x199   :  { %1147 = vmatpush3.bf16.msra.mxu1 %v1146_v47  ;;  %v575_v47 = vld [vmem:[#allocation13 + $0x70] sm:$0xff] }
 0x19a   :  { %1148 = vmatprep.subr.bf16.mxu1 %v1502_v0 }
 0x19d   :  { %1150 = vmatpush3.bf16.msra.mxu1 %v1149_v55 }
 0x19e   :  { %1151 = vmatprep.subr.bf16.mxu1 %v1502_v0 }
 0x1a1   :  { %1153 = vmatpush3.bf16.msra.mxu1 %v1152_v58  ;;  %v1197_v58 = vpack.c.bf16 %v660_v57, %v659_v56 }
 0x1a2   :  { %1154 = vmatprep.subr.bf16.mxu1 %v1502_v0 }
 0x1a5   :  { %1156 = vmatpush3.bf16.msra.mxu1 %v1155_v61  ;;  %v663_v61 = vld [vmem:[#allocation14 + $0x40] sm:$0xff] }
 0x1a6   :  { %1157 = vmatprep.subr.bf16.mxu1 %v1502_v0  ;;  %v1203_v63 = vpack.c.bf16 %v664_v62, %v663_v61 }
 0x1a9   :  { %1159 = vmatpush3.bf16.msra.mxu1 %v1158_v2  ;;  %v665_v2 = vld [vmem:[#allocation14 + $0x50] sm:$0xff] }
 0x1aa   :  { %1160 = vmatprep.subr.bf16.mxu1 %v1502_v0  ;;  %v1206_v4 = vpack.c.bf16 %v666_v3, %v665_v2 }
 0x1ad   :  { %1162 = vmatpush3.bf16.msra.mxu1 %v1161_v5  ;;  %v667_v5 = vld [vmem:[#allocation14 + $0x60] sm:$0xff] }
 0x1ae   :  { %1163 = vmatprep.subr.bf16.mxu1 %v1502_v0  ;;  %v1209_v7 = vpack.c.bf16 %v668_v6, %v667_v5 }
 0x1b1   :  { %1165 = vmatpush3.bf16.msra.mxu1 %v1164_v8  ;;  %v799_v8 = vld [vmem:[%s1825_s9] ss:$0 sm:$0xff]  ;;  %s767_s9 = sshll.u32 %s1505_s0, 4  ;;  %s768_s9 = int_to_ptr.vmem [resolvable:$true] %s767_s9 }
 0x1b2   :  { %1190 = vmatprep.subr.bf16.mxu1 %v1502_v0  ;;  %s1410_s18 = scalar_lea.vmem %s768_s9, 128  ;;  %p1415_p9 = scmp.lt.s32.totalorder %s768_s9, %s768_s9 }
 0x1b3   :  { %p1411_p8 = scmp.ne.s32.totalorder %s768_s9, %s1410_s18  ;;  %p1416_p10 = scmp.lt.s32.totalorder %s1410_s18, %s1410_s18 }
 0x1b5   :  { %p1417_p11 = por %p1416_p10, %p1415_p9 }
 0x1b7   :  { %p1418_p12 = pnand %p1417_p11, %p1411_p8 }
 0x267   :  { %v341_v49 = vpop.f32.mrb[0].mxu1 }
 0x268   :  { %v342_v50 = vadd.f32 %v798_v48, %v341_v49  ;;  %v956_v51 = vpop.f32.mrb[1].mxu1  ;;  %v576_v48 = vld [vmem:[#allocation13 + $0x78] sm:$0xff] }
 0x269   :  { %v1188_v49 = vpack.c.bf16 %v576_v48, %v575_v47  ;;  %v656_v51 = vld [vmem:[#allocation14 + $0x8] sm:$0xff] }
 0x26a   :  { %v345_v52 = vmax.f32 %v342_v50, 0.0  ;;  %v655_v50 = vld [vmem:[#allocation14] sm:$0xff] }
 0x26b   :  { %v1191_v53 = vpack.c.bf16 %v656_v51, %v655_v50 }
 0x26c   :  { %455 = vmatmul.mubr.f32.vlgmr.msra.gmra.mrb[2].mxu0 %v345_v52  ;;  %v657_v52 = vld [vmem:[#allocation14 + $0x10] sm:$0xff] }
 0x26d   :  { %1024 = vmatprep.mubr.msk.f32.mxu0 %vm1503_vm0, %v1504_v1  ;;  %1168 = vmatpush3.bf16.msra.mxu0 %v1167_v12  ;;  %v1194_v55 = vpack.c.bf16 %v658_v54, %v657_v52 }
 0x26e   :  { %1169 = vmatprep.subr.bf16.mxu0 %v1502_v0 }
 0x271   :  { %1171 = vmatpush3.bf16.msra.mxu0 %v1170_v14  ;;  %v670_v14 = vld [vmem:[#allocation14 + $0x78] sm:$0xff] }
 0x272   :  { %1172 = vmatprep.subr.bf16.mxu0 %v1502_v0  ;;  %v1212_v15 = vpack.c.bf16 %v670_v14, %v669_v13 }
 0x275   :  { %1174 = vmatpush3.bf16.msra.mxu0 %v1173_v17 }
 0x276   :  { %1175 = vmatprep.subr.bf16.mxu0 %v1502_v0 }
 0x279   :  { %1177 = vmatpush3.bf16.msra.mxu0 %v1176_v20 }
 0x27a   :  { %1178 = vmatprep.subr.bf16.mxu0 %v1502_v0 }
 0x27d   :  { %1180 = vmatpush3.bf16.msra.mxu0 %v1179_v23 }
 0x27e   :  { %1181 = vmatprep.subr.bf16.mxu0 %v1502_v0 }
 0x281   :  { %1183 = vmatpush3.bf16.msra.mxu0 %v1182_v26 }
 0x282   :  { %1184 = vmatprep.subr.bf16.mxu0 %v1502_v0 }
 0x285   :  { %1186 = vmatpush3.bf16.msra.mxu0 %v1185_v29 }
 0x286   :  { %1187 = vmatprep.subr.bf16.mxu0 %v1502_v0 }
 0x289   :  { %1189 = vmatpush3.bf16.msra.mxu0 %v1188_v49 }
 0x33f   :  { %v456_v37 = vpop.f32.mrb[2].mxu0 }
 0x340   :  { %v457_v38 = vadd.f32 %v456_v37, %v383_v35  ;;  %v458_v39 = vpop.f32.mrb[3].mxu0 }
 0x341   :  { %v459_v40 = vadd.f32 %v458_v39, %v387_v36 }
 0x342   :  { %749 = vst [vmem:[#allocation17] sm:$0xff] %v457_v38 }
 0x343   :  { %v462_v41 = vmul.f32 0.5, %v459_v40  ;;  %750 = vst [vmem:[#allocation19] sm:$0xff] %v459_v40 }
 0x345   :  { %v463_v42 = vmul.f32 1.442695, %v462_v41 }
 0x347   :  { %1232 = vpow2.f32 %v463_v42 }
 0x351   :  { %v1233_v44 = vpop.eup %1232 }
 0x352   :  { %v465_v45 = vmul.f32 %v1233_v44, %v461_v43 }
 0x354   :  { %v466_v46 = vadd.f32 %v465_v45, %v457_v38 }
 0x356   :  { %990 = vmatmul.mubr.f32.vlgmr.msra.gmra.mrb[2].mxu1 %v466_v46 }
 0x357   :  { %1059 = vmatprep.mubr.msk.f32.mxu1 %vm1503_vm0, %v1504_v1  ;;  %1192 = vmatpush3.bf16.msra.mxu1 %v1191_v53  ;;  %v661_v1 = vld [vmem:[#allocation14 + $0x30] sm:$0xff] }
 0x358   :  { %1193 = vmatprep.subr.bf16.mxu1 %v1502_v0  ;;  %v1200_v60 = vpack.c.bf16 %v662_v59, %v661_v1 }
 0x35b   :  { %1195 = vmatpush3.bf16.msra.mxu1 %v1194_v55 }
 0x35c   :  { %1196 = vmatprep.subr.bf16.mxu1 %v1502_v0 }
 0x35f   :  { %1198 = vmatpush3.bf16.msra.mxu1 %v1197_v58 }
 0x360   :  { %1199 = vmatprep.subr.bf16.mxu1 %v1502_v0 }
 0x363   :  { %1201 = vmatpush3.bf16.msra.mxu1 %v1200_v60 }
 0x364   :  { %1202 = vmatprep.subr.bf16.mxu1 %v1502_v0 }
 0x367   :  { %1204 = vmatpush3.bf16.msra.mxu1 %v1203_v63 }
 0x368   :  { %1205 = vmatprep.subr.bf16.mxu1 %v1502_v0 }
 0x36b   :  { %1207 = vmatpush3.bf16.msra.mxu1 %v1206_v4 }
 0x36c   :  { %1208 = vmatprep.subr.bf16.mxu1 %v1502_v0 }
 0x36f   :  { %1210 = vmatpush3.bf16.msra.mxu1 %v1209_v7 }
 0x370   :  { %1211 = vmatprep.subr.bf16.mxu1 %v1502_v0 }
 0x373   :  { %1213 = vmatpush3.bf16.msra.mxu1 %v1212_v15 }
 0x429   :  { %v556_v9 = vpop.f32.mrb[2].mxu1 }
 0x42a   :  { %v557_v10 = vadd.f32 %v799_v8, %v556_v9  ;;  %v991_v11 = vpop.f32.mrb[3].mxu1 }
 0x42c   :  { %v560_v12 = vmax.f32 %v557_v10, 0.0 }
 0x42e   :  { %1025 = vmatmul.mubr.f32.vlgmr.msra.gmra.mrb[4].mxu0 %v560_v12 }
 0x501   :  { %v650_v17 = vpop.f32.mrb[4].mxu0 }
 0x502   :  { %v651_v18 = vadd.f32 %v800_v16, %v650_v17  ;;  %v1026_v0 = vpop.f32.mrb[5].mxu0 }
 0x504   :  { %v654_v19 = vmax.f32 %v651_v18, 0.0 }
 0x506   :  { %1060 = vmatmul.mubr.f32.vlgmr.msra.gmra.mrb[4].mxu1 %v654_v19 }
 0x507   :  { %1421 = shalt.err (!%p1418_p12)
}
 0x508   :  { %s1422_s20 = scalar_lea.hbm %s1831_s15, 128 }
 0x509   :  { %p1423_p13 = scmp.ne.s32.totalorder %s1831_s15, %s1422_s20  ;;  %p1426_p0 = scmp.lt.u32.totalorder %s1422_s20, %s1831_s15 }
 0x50b   :  { %p1428_p1 = pnand %p1426_p0, %p1423_p13 }
 0x50d   :  { %1431 = shalt.err (!%p1428_p1)
}
 0x50e   :  { %770 = dma.vmem_to_hbm [thread:$0]  %s768_s9, 128, %s1831_s15, [#allocation18]  }
 0x50f   :  { %s1506_s23 = smov [#allocation19]  }
 0x510   :  { %s777_s8 = sshll.u32 %s1506_s23, 4  ;;  %s778_s8 = int_to_ptr.vmem [resolvable:$true] %s777_s8 }
 0x511   :  { %s1432_s21 = scalar_lea.vmem %s778_s8, 128  ;;  %p1437_p3 = scmp.lt.s32.totalorder %s778_s8, %s778_s8 }
 0x512   :  { %p1433_p2 = scmp.ne.s32.totalorder %s778_s8, %s1432_s21  ;;  %p1438_p4 = scmp.lt.s32.totalorder %s1432_s21, %s1432_s21 }
 0x514   :  { %p1439_p5 = por %p1438_p4, %p1437_p3 }
 0x516   :  { %p1440_p6 = pnand %p1439_p5, %p1433_p2 }
 0x518   :  { %1443 = shalt.err (!%p1440_p6)
}
 0x519   :  { %s1444_s12 = scalar_lea.hbm %s1832_s16, 128 }
 0x51a   :  { %p1445_p7 = scmp.ne.s32.totalorder %s1832_s16, %s1444_s12  ;;  %p1448_p8 = scmp.lt.u32.totalorder %s1444_s12, %s1832_s16 }
 0x51c   :  { %p1450_p9 = pnand %p1448_p8, %p1445_p7 }
 0x51e   :  { %1453 = shalt.err (!%p1450_p9)
}
 0x51f   :  { %780 = dma.vmem_to_hbm [thread:$0]  %s778_s8, 128, %s1832_s16, [#allocation18]   ;;  %v801_v20 = vld [vmem:[%s1829_s13] ss:$0 sm:$0xff] }
 0x520   :  { %s1507_s19 = smov [#allocation16]  }
 0x521   :  { %s757_s29 = sshll.u32 %s1507_s19, 4  ;;  %s758_s29 = int_to_ptr.vmem [resolvable:$true] %s757_s29 }
 0x522   :  { %s1454_s0 = scalar_lea.vmem %s758_s29, 128  ;;  %p1459_p11 = scmp.lt.s32.totalorder %s758_s29, %s758_s29 }
 0x523   :  { %p1455_p10 = scmp.ne.s32.totalorder %s758_s29, %s1454_s0  ;;  %p1460_p12 = scmp.lt.s32.totalorder %s1454_s0, %s1454_s0 }
 0x525   :  { %p1461_p13 = por %p1460_p12, %p1459_p11 }
 0x527   :  { %p1462_p0 = pnand %p1461_p13, %p1455_p10 }
 0x5d9   :  { %v744_v21 = vpop.f32.mrb[4].mxu1 }
 0x5da   :  { %v745_v22 = vadd.f32 %v801_v20, %v744_v21  ;;  %v1061_v23 = vpop.f32.mrb[5].mxu1 }
 0x5dc   :  { %748 = vst [vmem:[#allocation16] sm:$0xff] %v745_v22 }
 0x5dd   :  { %1465 = shalt.err (!%p1462_p0)
}
 0x5de   :  { %s1466_s18 = scalar_lea.hbm %s1830_s14, 128 }
 0x5df   :  { %p1467_p1 = scmp.ne.s32.totalorder %s1830_s14, %s1466_s18  ;;  %p1470_p2 = scmp.lt.u32.totalorder %s1466_s18, %s1830_s14 }
 0x5e1   :  { %p1472_p3 = pnand %p1470_p2, %p1467_p1 }
 0x5e3   :  { %1475 = shalt.err (!%p1472_p3)
}
 0x5e4   :  { %760 = dma.vmem_to_hbm [thread:$0]  %s758_s29, 128, %s1830_s14, [#allocation4]  }
 0x5e5   :  { %1486 = dma.done.wait [#allocation4], 128  }
 0x5e6   :  { %1487 = vsyncadd [#allocation4], 4294967168 }
 0x5e7   :  { %1488 = dma.done.wait [#allocation18], 256  }
 0x5e8   :  { %1489 = vsyncadd [#allocation18], 4294967040 }
 0x5e9   :  { %790 = vsyncpa [#allocation3], 1 }
 0x5ea   :  { %791 = vsyncpa [#allocation6], 1 }
 0x5eb   :  { %792 = vsyncpa [#allocation9], 1 }
 0x5ec   :  { %793 = vsyncpa [#allocation12], 1 }
 0x5ed   :  { %794 = vsyncpa [#allocation15], 1 }
 0x5ee   :  { %795 = vsyncpa [#allocation4], 1 }
 0x5ef   :  { %796 = vsyncpa [#allocation18], 1 }

// kernel: tpu_custom_call.1
= control target key start
LH: loop header
LB: loop body
LE: loop exit
PB: predicated region body
PF: predicated region fallthrough
CT: control target
= control target key end

     0   :  { %s1816_s0 = inlined_call_operand.hbm [shape: f32[8,128], index: 0, kind: input, shape index: {}]   ;;  %s1817_s1 = inlined_call_operand.hbm [shape: f32[8,128], index: 1, kind: input, shape index: {}]   ;;  %s1818_s2 = inlined_call_operand.hbm [shape: f32[128,128], index: 2, kind: input, shape index: {}]   ;;  %s1819_s3 = inlined_call_operand.vmem [shape: f32[1,128], index: 3, kind: input, shape index: {}]   ;;  %s1820_s4 = inlined_call_operand.hbm [shape: f32[128,128], index: 4, kind: input, shape index: {}]   ;;  %s1821_s5 = inlined_call_operand.vmem [shape: f32[1,128], index: 5, kind: input, shape index: {}]   ;;  %s1822_s6 = inlined_call_operand.hbm [shape: f32[128,256], index: 6, kind: input, shape index: {}]   ;;  %s1823_s7 = inlined_call_operand.vmem [shape: f32[1,256], index: 7, kind: input, shape index: {}]   ;;  %s1824_s8 = inlined_call_operand.hbm [shape: f32[128,128], index: 8, kind: input, shape index: {}]   ;;  %s1825_s9 = inlined_call_operand.vmem [shape: f32[1,128], index: 9, kind: input, shape index: {}]   ;;  %s1826_s10 = inlined_call_operand.hbm [shape: f32[128,128], index: 10, kind: input, shape index: {}]   ;;  %s1827_s11 = inlined_call_operand.vmem [shape: f32[1,128], index: 11, kind: input, shape index: {}]   ;;  %s1828_s12 = inlined_call_operand.hbm [shape: f32[128,128], index: 12, kind: input, shape index: {}]   ;;  %s1829_s13 = inlined_call_operand.vmem [shape: f32[1,128], index: 13, kind: input, shape index: {}]   ;;  %s1830_s14 = inlined_call_operand.hbm [shape: f32[8,128], index: 14, kind: output, shape index: {0}]   ;;  %s1831_s15 = inlined_call_operand.hbm [shape: f32[8,128], index: 15, kind: output, shape index: {1}]   ;;  %s1832_s16 = inlined_call_operand.hbm [shape: f32[8,128], index: 16, kind: output, shape index: {2}]  }
   0x1   :  { %1834 = sst [smem:[#allocation27_spill]] %s1816_s0 }
   0x2   :  { %22 = vsyncpa [#allocation3], 0 }
   0x3   :  { %23 = vsyncpa [#allocation6], 0 }
   0x4   :  { %24 = vsyncpa [#allocation9], 0 }
   0x5   :  { %25 = vsyncpa [#allocation12], 0 }
   0x6   :  { %26 = vsyncpa [#allocation15], 0 }
   0x7   :  { %27 = vsyncpa [#allocation4], 0 }
   0x8   :  { %28 = vsyncpa [#allocation18], 0  ;;  %s1490_s21 = smov [#allocation5]   ;;  %s1234_s25 = scalar_lea.hbm %s1817_s1, 128 }
   0x9   :  { %s45_s22 = sshll.u32 %s1490_s21, 4  ;;  %p1235_p0 = scmp.ne.s32.totalorder %s1817_s1, %s1234_s25  ;;  %s46_s22 = int_to_ptr.vmem [resolvable:$true] %s45_s22 }
   0xa   :  { %p1238_p1 = scmp.lt.u32.totalorder %s1234_s25, %s1817_s1 }
   0xc   :  { %p1240_p2 = pnand %p1238_p1, %p1235_p0 }
   0xe   :  { %1243 = shalt.err (!%p1240_p2)
}
   0xf   :  { %s1244_s30 = scalar_lea.vmem %s46_s22, 128  ;;  %p1249_p4 = scmp.lt.s32.totalorder %s46_s22, %s46_s22 }
  0x10   :  { %p1245_p3 = scmp.ne.s32.totalorder %s46_s22, %s1244_s30  ;;  %p1250_p5 = scmp.lt.s32.totalorder %s1244_s30, %s1244_s30 }
  0x12   :  { %p1251_p6 = por %p1250_p5, %p1249_p4 }
  0x14   :  { %p1252_p7 = pnand %p1251_p6, %p1245_p3 }
  0x16   :  { %1255 = shalt.err (!%p1252_p7)
}
  0x17   :  { %48 = dma.hbm_to_vmem [thread:$0]  %s1817_s1, 128, %s46_s22, [#allocation6]  }
  0x18   :  { %s1491_s18 = smov [#allocation8]   ;;  %s1492_s20 = smov [#allocation11]  }
  0x19   :  { %s68_s19 = sshll.u32 %s1491_s18, 4  ;;  %s96_s21 = sshll.u32 %s1492_s20, 4  ;;  %s69_s19 = int_to_ptr.vmem [resolvable:$true] %s68_s19  ;;  %s97_s21 = int_to_ptr.vmem [resolvable:$true] %s96_s21 }
  0x1a   :  { %s1256_s25 = scalar_lea.hbm %s1820_s4, 2048 }
  0x1b   :  { %p1257_p8 = scmp.ne.s32.totalorder %s1820_s4, %s1256_s25  ;;  %p1260_p9 = scmp.lt.u32.totalorder %s1256_s25, %s1820_s4 }
  0x1d   :  { %p1262_p10 = pnand %p1260_p9, %p1257_p8 }
  0x1f   :  { %1265 = shalt.err (!%p1262_p10)
}
  0x20   :  { %s1266_s1 = scalar_lea.vmem %s69_s19, 2048  ;;  %p1271_p12 = scmp.lt.s32.totalorder %s69_s19, %s69_s19 }
  0x21   :  { %p1267_p11 = scmp.ne.s32.totalorder %s69_s19, %s1266_s1  ;;  %p1272_p13 = scmp.lt.s32.totalorder %s1266_s1, %s1266_s1 }
  0x23   :  { %p1273_p0 = por %p1272_p13, %p1271_p12 }
  0x25   :  { %p1274_p1 = pnand %p1273_p0, %p1267_p11 }
  0x27   :  { %1277 = shalt.err (!%p1274_p1)
}
  0x28   :  { %s1493_s22 = smov 128   ;;  %s1494_s30 = smov 8  }
  0x29   :  { %74 = dma.hbm_to_vmem [thread:$0]  %s1820_s4, 2048, %s69_s19, [#allocation9], %s1493_s22, %s1493_s22, %s1494_s30  }
  0x2a   :  { %s1278_s23 = scalar_lea.hbm %s1824_s8, 2048 }
  0x2b   :  { %p1279_p2 = scmp.ne.s32.totalorder %s1824_s8, %s1278_s23  ;;  %p1282_p3 = scmp.lt.u32.totalorder %s1278_s23, %s1824_s8 }
  0x2d   :  { %p1284_p4 = pnand %p1282_p3, %p1279_p2 }
  0x2f   :  { %1287 = shalt.err (!%p1284_p4)
}
  0x30   :  { %s1288_s28 = scalar_lea.vmem %s97_s21, 2048  ;;  %p1293_p6 = scmp.lt.s32.totalorder %s97_s21, %s97_s21 }
  0x31   :  { %p1289_p5 = scmp.ne.s32.totalorder %s97_s21, %s1288_s28  ;;  %p1294_p7 = scmp.lt.s32.totalorder %s1288_s28, %s1288_s28 }
  0x33   :  { %p1295_p8 = por %p1294_p7, %p1293_p6 }
  0x35   :  { %p1296_p9 = pnand %p1295_p8, %p1289_p5 }
  0x37   :  { %1299 = shalt.err (!%p1296_p9)
}
  0x38   :  { %102 = dma.hbm_to_vmem [thread:$0]  %s1824_s8, 2048, %s97_s21, [#allocation12], %s1493_s22, %s1493_s22, %s1494_s30  }
  0x39   :  { %s1495_s29 = smov [#allocation2]   ;;  %s1496_s0 = smov [#allocation7]  }
  0x3a   :  { %s35_s1 = sshll.u32 %s1495_s29, 4  ;;  %s54_s17 = sshll.u32 %s1496_s0, 4  ;;  %s36_s1 = int_to_ptr.vmem [resolvable:$true] %s35_s1  ;;  %s55_s17 = int_to_ptr.vmem [resolvable:$true] %s54_s17 }
  0x3b   :  { %s1835_s23 = sld [smem:[#allocation27_spill]] }
  0x41   :  { %s1300_s24 = scalar_lea.hbm %s1835_s23, 128 }
  0x42   :  { %p1301_p10 = scmp.ne.s32.totalorder %s1835_s23, %s1300_s24  ;;  %p1304_p11 = scmp.lt.u32.totalorder %s1300_s24, %s1835_s23 }
  0x44   :  { %p1306_p12 = pnand %p1304_p11, %p1301_p10 }
  0x46   :  { %1309 = shalt.err (!%p1306_p12)
}
  0x47   :  { %s1310_s8 = scalar_lea.vmem %s36_s1, 128  ;;  %p1315_p0 = scmp.lt.s32.totalorder %s36_s1, %s36_s1 }
  0x48   :  { %p1311_p13 = scmp.ne.s32.totalorder %s36_s1, %s1310_s8  ;;  %p1316_p1 = scmp.lt.s32.totalorder %s1310_s8, %s1310_s8 }
  0x4a   :  { %p1317_p2 = por %p1316_p1, %p1315_p0 }
  0x4c   :  { %p1318_p3 = pnand %p1317_p2, %p1311_p13 }
  0x4e   :  { %1321 = shalt.err (!%p1318_p3)
}
  0x4f   :  { %38 = dma.hbm_to_vmem [thread:$0]  %s1835_s23, 128, %s36_s1, [#allocation3]  }
  0x50   :  { %s1322_s0 = scalar_lea.hbm %s1818_s2, 2048 }
  0x51   :  { %p1323_p4 = scmp.ne.s32.totalorder %s1818_s2, %s1322_s0  ;;  %p1326_p5 = scmp.lt.u32.totalorder %s1322_s0, %s1818_s2 }
  0x53   :  { %p1328_p6 = pnand %p1326_p5, %p1323_p4 }
  0x55   :  { %1331 = shalt.err (!%p1328_p6)
}
  0x56   :  { %s1332_s26 = scalar_lea.vmem %s55_s17, 2048  ;;  %p1337_p8 = scmp.lt.s32.totalorder %s55_s17, %s55_s17 }
  0x57   :  { %p1333_p7 = scmp.ne.s32.totalorder %s55_s17, %s1332_s26  ;;  %p1338_p9 = scmp.lt.s32.totalorder %s1332_s26, %s1332_s26 }
  0x59   :  { %p1339_p10 = por %p1338_p9, %p1337_p8 }
  0x5b   :  { %p1340_p11 = pnand %p1339_p10, %p1333_p7 }
  0x5d   :  { %1343 = shalt.err (!%p1340_p11)
}
  0x5e   :  { %60 = dma.hbm_to_vmem [thread:$0]  %s1818_s2, 2048, %s55_s17, [#allocation6], %s1493_s22, %s1493_s22, %s1494_s30  }
  0x5f   :  { %s1497_s27 = smov [#allocation10]   ;;  %s1344_s4 = scalar_lea.hbm %s1822_s6, 4096 }
  0x60   :  { %s82_s28 = sshll.u32 %s1497_s27, 4  ;;  %p1345_p12 = scmp.ne.s32.totalorder %s1822_s6, %s1344_s4  ;;  %s83_s28 = int_to_ptr.vmem [resolvable:$true] %s82_s28 }
  0x61   :  { %p1348_p13 = scmp.lt.u32.totalorder %s1344_s4, %s1822_s6 }
  0x63   :  { %p1350_p0 = pnand %p1348_p13, %p1345_p12 }
  0x65   :  { %1353 = shalt.err (!%p1350_p0)
}
  0x66   :  { %s1354_s20 = scalar_lea.vmem %s83_s28, 4096  ;;  %p1359_p2 = scmp.lt.s32.totalorder %s83_s28, %s83_s28 }
  0x67   :  { %p1355_p1 = scmp.ne.s32.totalorder %s83_s28, %s1354_s20  ;;  %p1360_p3 = scmp.lt.s32.totalorder %s1354_s20, %s1354_s20 }
  0x69   :  { %p1361_p4 = por %p1360_p3, %p1359_p2 }
  0x6b   :  { %p1362_p5 = pnand %p1361_p4, %p1355_p1 }
  0x6d   :  { %1365 = shalt.err (!%p1362_p5)
}
  0x6e   :  { %s1498_s2 = smov 256   ;;  %s1499_s17 = smov 16  }
  0x6f   :  { %88 = dma.hbm_to_vmem [thread:$0]  %s1822_s6, 4096, %s83_s28, [#allocation9], %s1498_s2, %s1498_s2, %s1499_s17  }
  0x70   :  { %s1500_s26 = smov [#allocation13]   ;;  %s1501_s23 = smov [#allocation14]  }
  0x71   :  { %s110_s1 = sshll.u32 %s1500_s26, 4  ;;  %s124_s27 = sshll.u32 %s1501_s23, 4  ;;  %s111_s1 = int_to_ptr.vmem [resolvable:$true] %s110_s1  ;;  %s1674_s27 = int_to_ptr.vmem [resolvable:$true] %s124_s27 }
  0x72   :  { %s1366_s4 = scalar_lea.hbm %s1826_s10, 2048 }
  0x73   :  { %p1367_p6 = scmp.ne.s32.totalorder %s1826_s10, %s1366_s4  ;;  %p1370_p7 = scmp.lt.u32.totalorder %s1366_s4, %s1826_s10 }
  0x75   :  { %p1372_p8 = pnand %p1370_p7, %p1367_p6 }
  0x77   :  { %1375 = shalt.err (!%p1372_p8)
}
  0x78   :  { %s1376_s6 = scalar_lea.vmem %s111_s1, 2048  ;;  %p1381_p10 = scmp.lt.s32.totalorder %s111_s1, %s111_s1 }
  0x79   :  { %p1377_p9 = scmp.ne.s32.totalorder %s111_s1, %s1376_s6  ;;  %p1382_p11 = scmp.lt.s32.totalorder %s1376_s6, %s1376_s6 }
  0x7b   :  { %p1383_p12 = por %p1382_p11, %p1381_p10 }
  0x7d   :  { %p1384_p13 = pnand %p1383_p12, %p1377_p9 }
  0x7f   :  { %1387 = shalt.err (!%p1384_p13)
}
  0x80   :  { %116 = dma.hbm_to_vmem [thread:$0]  %s1826_s10, 2048, %s111_s1, [#allocation12], %s1493_s22, %s1493_s22, %s1494_s30  }
  0x81   :  { %s1388_s24 = scalar_lea.hbm %s1828_s12, 2048 }
  0x82   :  { %p1389_p0 = scmp.ne.s32.totalorder %s1828_s12, %s1388_s24  ;;  %p1392_p1 = scmp.lt.u32.totalorder %s1388_s24, %s1828_s12 }
  0x84   :  { %p1394_p2 = pnand %p1392_p1, %p1389_p0 }
  0x86   :  { %1397 = shalt.err (!%p1394_p2)
}
  0x87   :  { %s1398_s21 = scalar_lea.vmem %s1674_s27, 2048  ;;  %p1403_p4 = scmp.lt.s32.totalorder %s1674_s27, %s1674_s27 }
  0x88   :  { %p1399_p3 = scmp.ne.s32.totalorder %s1674_s27, %s1398_s21  ;;  %p1404_p5 = scmp.lt.s32.totalorder %s1398_s21, %s1398_s21 }
  0x8a   :  { %p1405_p6 = por %p1404_p5, %p1403_p4 }
  0x8c   :  { %p1406_p7 = pnand %p1405_p6, %p1399_p3 }
  0x8e   :  { %1409 = shalt.err (!%p1406_p7)
}
  0x8f   :  { %130 = dma.hbm_to_vmem [thread:$0]  %s1828_s12, 2048, %s1674_s27, [#allocation15], %s1493_s22, %s1493_s22, %s1494_s30  }
  0x90   :  { %1476 = dma.done.wait [#allocation3], 128  }
  0x91   :  { %1477 = vsyncadd [#allocation3], 4294967168 }
  0x92   :  { %1478 = dma.done.wait [#allocation6], 2176  }
  0x93   :  { %1479 = vsyncadd [#allocation6], 4294965120 }
  0x94   :  { %1480 = dma.done.wait [#allocation9], 6144  }
  0x95   :  { %1481 = vsyncadd [#allocation9], 4294961152 }
  0x96   :  { %1482 = dma.done.wait [#allocation12], 4096  }
  0x97   :  { %1483 = vsyncadd [#allocation12], 4294963200 }
  0x98   :  { %1484 = dma.done.wait [#allocation15], 2048  }
  0x99   :  { %1485 = vsyncadd [#allocation15], 4294965248  ;;  %v1502_v0 = vmov 0.0|0.0   ;;  %vm1503_vm0 = vmmov 0   ;;  %v1504_v1 = vmov 0.0   ;;  %v158_v2 = vld [vmem:[#allocation7] sm:$0xff] }
  0x9a   :  { %1062 = vmatprep.subr.bf16.mxu0 %v1502_v0  ;;  %919 = vmatprep.mubr.msk.f32.mxu0 %vm1503_vm0, %v1504_v1  ;;  %v159_v3 = vld [vmem:[#allocation7 + $0x8] sm:$0xff]  ;;  %v160_v4 = vld [vmem:[#allocation7 + $0x10] sm:$0xff]  ;;  %v161_v6 = vld [vmem:[#allocation7 + $0x18] sm:$0xff]  ;;  %s1505_s0 = smov [#allocation17]  }
  0x9b   :  { %1086 = vmatprep.subr.bf16.mxu1 %v1502_v0  ;;  %954 = vmatprep.mubr.msk.f32.mxu1 %vm1503_vm0, %v1504_v1  ;;  %v1063_v5 = vpack.c.bf16 %v159_v3, %v158_v2  ;;  %v1066_v7 = vpack.c.bf16 %v161_v6, %v160_v4  ;;  %v162_v8 = vld [vmem:[#allocation7 + $0x20] sm:$0xff]  ;;  %v163_v9 = vld [vmem:[#allocation7 + $0x28] sm:$0xff]  ;;  %v254_v12 = vld [vmem:[#allocation8 + $0x10] sm:$0xff] }
  0x9c   :  { %v252_v10 = vld [vmem:[#allocation8] sm:$0xff]  ;;  %v253_v11 = vld [vmem:[#allocation8 + $0x8] sm:$0xff]  ;;  %v255_v13 = vld [vmem:[#allocation8 + $0x18] sm:$0xff]  ;;  %v1069_v14 = vpack.c.bf16 %v163_v9, %v162_v8 }
  0x9d   :  { %1064 = vmatpush3.bf16.msra.mxu0 %v1063_v5  ;;  %v1087_v15 = vpack.c.bf16 %v253_v11, %v252_v10  ;;  %v164_v16 = vld [vmem:[#allocation7 + $0x30] sm:$0xff]  ;;  %v165_v17 = vld [vmem:[#allocation7 + $0x38] sm:$0xff]  ;;  %v1090_v18 = vpack.c.bf16 %v255_v13, %v254_v12  ;;  %v256_v19 = vld [vmem:[#allocation8 + $0x20] sm:$0xff] }
  0x9e   :  { %1065 = vmatprep.subr.bf16.mxu0 %v1502_v0  ;;  %v257_v20 = vld [vmem:[#allocation8 + $0x28] sm:$0xff]  ;;  %v1072_v21 = vpack.c.bf16 %v165_v17, %v164_v16  ;;  %v166_v22 = vld [vmem:[#allocation7 + $0x40] sm:$0xff]  ;;  %v258_v25 = vld [vmem:[#allocation8 + $0x30] sm:$0xff] }
  0x9f   :  { %1088 = vmatpush3.bf16.msra.mxu1 %v1087_v15  ;;  %v167_v23 = vld [vmem:[#allocation7 + $0x48] sm:$0xff]  ;;  %v1093_v24 = vpack.c.bf16 %v257_v20, %v256_v19  ;;  %v259_v26 = vld [vmem:[#allocation8 + $0x38] sm:$0xff]  ;;  %v168_v28 = vld [vmem:[#allocation7 + $0x50] sm:$0xff] }
  0xa0   :  { %1089 = vmatprep.subr.bf16.mxu1 %v1502_v0  ;;  %v1075_v27 = vpack.c.bf16 %v167_v23, %v166_v22  ;;  %v169_v29 = vld [vmem:[#allocation7 + $0x58] sm:$0xff]  ;;  %v1096_v30 = vpack.c.bf16 %v259_v26, %v258_v25  ;;  %v260_v31 = vld [vmem:[#allocation8 + $0x40] sm:$0xff]  ;;  %v261_v32 = vld [vmem:[#allocation8 + $0x48] sm:$0xff] }
  0xa1   :  { %1067 = vmatpush3.bf16.msra.mxu0 %v1066_v7  ;;  %v1078_v33 = vpack.c.bf16 %v169_v29, %v168_v28  ;;  %v170_v34 = vld [vmem:[#allocation7 + $0x60] sm:$0xff]  ;;  %v171_v35 = vld [vmem:[#allocation7 + $0x68] sm:$0xff]  ;;  %v1099_v36 = vpack.c.bf16 %v261_v32, %v260_v31  ;;  %v262_v37 = vld [vmem:[#allocation8 + $0x50] sm:$0xff] }
  0xa2   :  { %1068 = vmatprep.subr.bf16.mxu0 %v1502_v0  ;;  %v263_v38 = vld [vmem:[#allocation8 + $0x58] sm:$0xff]  ;;  %v1081_v39 = vpack.c.bf16 %v171_v35, %v170_v34  ;;  %v172_v40 = vld [vmem:[#allocation7 + $0x70] sm:$0xff]  ;;  %v264_v43 = vld [vmem:[#allocation8 + $0x60] sm:$0xff] }
  0xa3   :  { %1091 = vmatpush3.bf16.msra.mxu1 %v1090_v18  ;;  %v173_v41 = vld [vmem:[#allocation7 + $0x78] sm:$0xff]  ;;  %v1102_v42 = vpack.c.bf16 %v263_v38, %v262_v37  ;;  %v265_v44 = vld [vmem:[#allocation8 + $0x68] sm:$0xff]  ;;  %v157_v47 = vld [vmem:[#allocation2] sm:$0xff] }
  0xa4   :  { %1092 = vmatprep.subr.bf16.mxu1 %v1502_v0  ;;  %v1084_v45 = vpack.c.bf16 %v173_v41, %v172_v40  ;;  %v1105_v46 = vpack.c.bf16 %v265_v44, %v264_v43  ;;  %v266_v48 = vld [vmem:[#allocation8 + $0x70] sm:$0xff]  ;;  %v267_v49 = vld [vmem:[#allocation8 + $0x78] sm:$0xff]  ;;  %v347_v51 = vld [vmem:[#allocation10 + $0x8] sm:$0xff] }
  0xa5   :  { %1070 = vmatpush3.bf16.msra.mxu0 %v1069_v14  ;;  %v1108_v50 = vpack.c.bf16 %v267_v49, %v266_v48  ;;  %v349_v52 = vld [vmem:[#allocation10 + $0x18] sm:$0xff]  ;;  %v346_v53 = vld [vmem:[#allocation10] sm:$0xff]  ;;  %v348_v55 = vld [vmem:[#allocation10 + $0x10] sm:$0xff] }
  0xa6   :  { %1071 = vmatprep.subr.bf16.mxu0 %v1502_v0  ;;  %v1110_v54 = vpack.c.bf16 %v349_v52, %v347_v51  ;;  %v351_v56 = vld [vmem:[#allocation10 + $0x28] sm:$0xff]  ;;  %v353_v57 = vld [vmem:[#allocation10 + $0x38] sm:$0xff]  ;;  %v1112_v58 = vpack.c.bf16 %v348_v55, %v346_v53  ;;  %v350_v60 = vld [vmem:[#allocation10 + $0x20] sm:$0xff] }
  0xa7   :  { %1094 = vmatpush3.bf16.msra.mxu1 %v1093_v24  ;;  %v1114_v59 = vpack.c.bf16 %v353_v57, %v351_v56  ;;  %v352_v61 = vld [vmem:[#allocation10 + $0x30] sm:$0xff]  ;;  %v355_v62 = vld [vmem:[#allocation10 + $0x48] sm:$0xff]  ;;  %v357_v63 = vld [vmem:[#allocation10 + $0x58] sm:$0xff] }
  0xa8   :  { %1095 = vmatprep.subr.bf16.mxu1 %v1502_v0  ;;  %v1116_v2 = vpack.c.bf16 %v352_v61, %v350_v60  ;;  %v1118_v3 = vpack.c.bf16 %v357_v63, %v355_v62  ;;  %v354_v4 = vld [vmem:[#allocation10 + $0x40] sm:$0xff]  ;;  %v356_v5 = vld [vmem:[#allocation10 + $0x50] sm:$0xff]  ;;  %v359_v6 = vld [vmem:[#allocation10 + $0x68] sm:$0xff] }
  0xa9   :  { %1073 = vmatpush3.bf16.msra.mxu0 %v1072_v21  ;;  %v361_v7 = vld [vmem:[#allocation10 + $0x78] sm:$0xff]  ;;  %v1120_v8 = vpack.c.bf16 %v356_v5, %v354_v4  ;;  %v358_v10 = vld [vmem:[#allocation10 + $0x60] sm:$0xff]  ;;  %v360_v11 = vld [vmem:[#allocation10 + $0x70] sm:$0xff] }
  0xaa   :  { %1074 = vmatprep.subr.bf16.mxu0 %v1502_v0  ;;  %v1122_v9 = vpack.c.bf16 %v361_v7, %v359_v6  ;;  %v363_v12 = vld [vmem:[#allocation10 + $0x88] sm:$0xff]  ;;  %v365_v13 = vld [vmem:[#allocation10 + $0x98] sm:$0xff]  ;;  %v1124_v14 = vpack.c.bf16 %v360_v11, %v358_v10  ;;  %v362_v16 = vld [vmem:[#allocation10 + $0x80] sm:$0xff] }
  0xab   :  { %1097 = vmatpush3.bf16.msra.mxu1 %v1096_v30  ;;  %v1126_v15 = vpack.c.bf16 %v365_v13, %v363_v12  ;;  %v364_v17 = vld [vmem:[#allocation10 + $0x90] sm:$0xff]  ;;  %v367_v18 = vld [vmem:[#allocation10 + $0xa8] sm:$0xff]  ;;  %v369_v19 = vld [vmem:[#allocation10 + $0xb8] sm:$0xff] }
  0xac   :  { %1098 = vmatprep.subr.bf16.mxu1 %v1502_v0  ;;  %v1128_v20 = vpack.c.bf16 %v364_v17, %v362_v16  ;;  %v1130_v21 = vpack.c.bf16 %v369_v19, %v367_v18  ;;  %v366_v22 = vld [vmem:[#allocation10 + $0xa0] sm:$0xff]  ;;  %v368_v23 = vld [vmem:[#allocation10 + $0xb0] sm:$0xff]  ;;  %v371_v24 = vld [vmem:[#allocation10 + $0xc8] sm:$0xff] }
  0xad   :  { %1076 = vmatpush3.bf16.msra.mxu0 %v1075_v27  ;;  %v373_v25 = vld [vmem:[#allocation10 + $0xd8] sm:$0xff]  ;;  %v1132_v26 = vpack.c.bf16 %v368_v23, %v366_v22  ;;  %v370_v28 = vld [vmem:[#allocation10 + $0xc0] sm:$0xff]  ;;  %v372_v29 = vld [vmem:[#allocation10 + $0xd0] sm:$0xff] }
  0xae   :  { %1077 = vmatprep.subr.bf16.mxu0 %v1502_v0  ;;  %v1134_v27 = vpack.c.bf16 %v373_v25, %v371_v24  ;;  %v1136_v30 = vpack.c.bf16 %v372_v29, %v370_v28  ;;  %v797_v31 = vld [vmem:[%s1819_s3] ss:$0 sm:$0xff]  ;;  %v377_v37 = vld [vmem:[#allocation10 + $0xf8] sm:$0xff]  ;;  %v468_v43 = vld [vmem:[#allocation11 + $0x8] sm:$0xff] }
  0xaf   :  { %1100 = vmatpush3.bf16.msra.mxu1 %v1099_v36  ;;  %v375_v36 = vld [vmem:[#allocation10 + $0xe8] sm:$0xff]  ;;  %v376_v40 = vld [vmem:[#allocation10 + $0xf0] sm:$0xff]  ;;  %v471_v53 = vld [vmem:[#allocation11 + $0x20] sm:$0xff] }
  0xb0   :  { %1101 = vmatprep.subr.bf16.mxu1 %v1502_v0  ;;  %v1138_v38 = vpack.c.bf16 %v377_v37, %v375_v36  ;;  %v469_v44 = vld [vmem:[#allocation11 + $0x10] sm:$0xff]  ;;  %v474_v57 = vld [vmem:[#allocation11 + $0x38] sm:$0xff]  ;;  %v476_v60 = vld [vmem:[#allocation11 + $0x48] sm:$0xff] }
  0xb1   :  { %1079 = vmatpush3.bf16.msra.mxu0 %v1078_v33  ;;  %v798_v48 = vld [vmem:[%s1821_s5] ss:$0 sm:$0xff]  ;;  %v478_v63 = vld [vmem:[#allocation11 + $0x58] sm:$0xff]  ;;  %v480_v4 = vld [vmem:[#allocation11 + $0x68] sm:$0xff] }
  0xb2   :  { %1080 = vmatprep.subr.bf16.mxu0 %v1502_v0  ;;  %v473_v56 = vld [vmem:[#allocation11 + $0x30] sm:$0xff]  ;;  %v482_v7 = vld [vmem:[#allocation11 + $0x78] sm:$0xff]  ;;  %v562_v10 = vld [vmem:[#allocation13 + $0x8] sm:$0xff] }
  0xb3   :  { %1103 = vmatpush3.bf16.msra.mxu1 %v1102_v42  ;;  %v467_v42 = vld [vmem:[#allocation11] sm:$0xff]  ;;  %v477_v62 = vld [vmem:[#allocation11 + $0x50] sm:$0xff]  ;;  %v564_v13 = vld [vmem:[#allocation13 + $0x18] sm:$0xff] }
  0xb4   :  { %1104 = vmatprep.subr.bf16.mxu1 %v1502_v0  ;;  %v481_v6 = vld [vmem:[#allocation11 + $0x70] sm:$0xff]  ;;  %v566_v16 = vld [vmem:[#allocation13 + $0x28] sm:$0xff]  ;;  %v568_v19 = vld [vmem:[#allocation13 + $0x38] sm:$0xff] }
  0xb5   :  { %1082 = vmatpush3.bf16.msra.mxu0 %v1081_v39  ;;  %v374_v39 = vld [vmem:[#allocation10 + $0xe0] sm:$0xff]  ;;  %v563_v11 = vld [vmem:[#allocation13 + $0x10] sm:$0xff]  ;;  %v570_v22 = vld [vmem:[#allocation13 + $0x48] sm:$0xff] }
  0xb6   :  { %1083 = vmatprep.subr.bf16.mxu0 %v1502_v0  ;;  %v1140_v41 = vpack.c.bf16 %v376_v40, %v374_v39  ;;  %v567_v18 = vld [vmem:[#allocation13 + $0x30] sm:$0xff]  ;;  %v572_v25 = vld [vmem:[#allocation13 + $0x58] sm:$0xff]  ;;  %v574_v28 = vld [vmem:[#allocation13 + $0x68] sm:$0xff] }
  0xb7   :  { %1106 = vmatpush3.bf16.msra.mxu1 %v1105_v46  ;;  %v470_v46 = vld [vmem:[#allocation11 + $0x18] sm:$0xff]  ;;  %v571_v24 = vld [vmem:[#allocation13 + $0x50] sm:$0xff] }
  0xb8   :  { %1107 = vmatprep.subr.bf16.mxu1 %v1502_v0 }
  0xb9   :  { %1085 = vmatpush3.bf16.msra.mxu0 %v1084_v45  ;;  %v1143_v45 = vpack.c.bf16 %v468_v43, %v467_v42  ;;  %v461_v43 = vld [vmem:[#allocation5] sm:$0xff] }
  0xba   :  { %1111 = vmatprep.subr.bf16.mxu0 %v1110_v54  ;;  %v472_v54 = vld [vmem:[#allocation11 + $0x28] sm:$0xff] }
  0xbb   :  { %1109 = vmatpush3.bf16.msra.mxu1 %v1108_v50  ;;  %v1149_v55 = vpack.c.bf16 %v472_v54, %v471_v53  ;;  %v658_v54 = vld [vmem:[#allocation14 + $0x18] sm:$0xff] }
  0xbc   :  { %920 = vmatmul.mubr.f32.vlgmr.msra.gmra.mrb[0].mxu0 %v157_v47  ;;  %1142 = vmatprep.subr.bf16.mxu1 %v1502_v0  ;;  %v1146_v47 = vpack.c.bf16 %v470_v46, %v469_v44 }
  0xbd   :  { %454 = vmatprep.mubr.f32.mxu0 %v1504_v1  ;;  %1113 = vmatpush1.bf16.msra.mxu0 %v1112_v58  ;;  %v1152_v58 = vpack.c.bf16 %v474_v57, %v473_v56  ;;  %v659_v56 = vld [vmem:[#allocation14 + $0x20] sm:$0xff]  ;;  %v660_v57 = vld [vmem:[#allocation14 + $0x28] sm:$0xff] }
  0xbe   :  { %1115 = vmatprep.subr.bf16.mxu0 %v1114_v59  ;;  %v475_v59 = vld [vmem:[#allocation11 + $0x40] sm:$0xff] }
  0xbf   :  { %v1155_v61 = vpack.c.bf16 %v476_v60, %v475_v59  ;;  %v662_v59 = vld [vmem:[#allocation14 + $0x38] sm:$0xff] }
  0xc1   :  { %1117 = vmatpush1.bf16.msra.mxu0 %v1116_v2  ;;  %v1158_v2 = vpack.c.bf16 %v478_v63, %v477_v62  ;;  %v664_v62 = vld [vmem:[#allocation14 + $0x48] sm:$0xff] }
  0xc2   :  { %1119 = vmatprep.subr.bf16.mxu0 %v1118_v3  ;;  %v479_v3 = vld [vmem:[#allocation11 + $0x60] sm:$0xff] }
  0xc3   :  { %v1161_v5 = vpack.c.bf16 %v480_v4, %v479_v3  ;;  %v666_v3 = vld [vmem:[#allocation14 + $0x58] sm:$0xff] }
  0xc5   :  { %1121 = vmatpush1.bf16.msra.mxu0 %v1120_v8  ;;  %v1164_v8 = vpack.c.bf16 %v482_v7, %v481_v6  ;;  %v668_v6 = vld [vmem:[#allocation14 + $0x68] sm:$0xff] }
  0xc6   :  { %1123 = vmatprep.subr.bf16.mxu0 %v1122_v9  ;;  %v561_v9 = vld [vmem:[#allocation13] sm:$0xff] }
  0xc7   :  { %v1167_v12 = vpack.c.bf16 %v562_v10, %v561_v9 }
  0xc9   :  { %1125 = vmatpush1.bf16.msra.mxu0 %v1124_v14  ;;  %v1170_v14 = vpack.c.bf16 %v564_v13, %v563_v11  ;;  %v669_v13 = vld [vmem:[#allocation14 + $0x70] sm:$0xff] }
  0xca   :  { %1127 = vmatprep.subr.bf16.mxu0 %v1126_v15  ;;  %v565_v15 = vld [vmem:[#allocation13 + $0x20] sm:$0xff] }
  0xcb   :  { %v1173_v17 = vpack.c.bf16 %v566_v16, %v565_v15  ;;  %v800_v16 = vld [vmem:[%s1827_s11] ss:$0 sm:$0xff] }
  0xcd   :  { %1129 = vmatpush1.bf16.msra.mxu0 %v1128_v20  ;;  %v1176_v20 = vpack.c.bf16 %v568_v19, %v567_v18 }
  0xce   :  { %1131 = vmatprep.subr.bf16.mxu0 %v1130_v21  ;;  %v569_v21 = vld [vmem:[#allocation13 + $0x40] sm:$0xff] }
  0xcf   :  { %v1179_v23 = vpack.c.bf16 %v570_v22, %v569_v21 }
  0xd1   :  { %1133 = vmatpush1.bf16.msra.mxu0 %v1132_v26  ;;  %v1182_v26 = vpack.c.bf16 %v572_v25, %v571_v24 }
  0xd2   :  { %1135 = vmatprep.subr.bf16.mxu0 %v1134_v27  ;;  %v573_v27 = vld [vmem:[#allocation13 + $0x60] sm:$0xff] }
  0xd3   :  { %v1185_v29 = vpack.c.bf16 %v574_v28, %v573_v27 }
  0xd5   :  { %1137 = vmatpush1.bf16.msra.mxu0 %v1136_v30  ;;  %v380_v30 = vlaneseq }
  0xd6   :  { %1139 = vmatprep.subr.bf16.mxu0 %v1138_v38 }
  0xd9   :  { %1141 = vmatpush1.bf16.msra.mxu0 %v1140_v41 }
  0xda   :  { %1166 = vmatprep.subr.bf16.mxu0 %v1502_v0 }
 0x18f   :  { %v247_v32 = vpop.f32.mrb[0].mxu0 }
 0x190   :  { %v248_v33 = vadd.f32 %v797_v31, %v247_v32  ;;  %v921_v34 = vpop.f32.mrb[1].mxu0  ;;  %v381_v31 = vshrl.u32 %v380_v30, 7 }
 0x192   :  { %v251_v35 = vmax.f32 %v248_v33, 0.0  ;;  %v382_v32 = vsub.s32 0, %v381_v31  ;;  %v378_v33 = vld [vmem:[%s1823_s7] sm:$0x3]  ;;  %v386_v34 = vsub.s32 1, %v381_v31 }
 0x194   :  { %955 = vmatmul.mubr.f32.vlgmr.msra.gmra.mrb[0].mxu1 %v251_v35  ;;  %v383_v35 = vrot.slane %v378_v33, %v382_v32  ;;  %v387_v36 = vrot.slane %v378_v33, %v386_v34 }
 0x195   :  { %989 = vmatprep.mubr.msk.f32.mxu1 %vm1503_vm0, %v1504_v1  ;;  %1144 = vmatpush3.bf16.msra.mxu1 %v1143_v45 }
 0x196   :  { %1145 = vmatprep.subr.bf16.mxu1 %v1502_v0 }
 0x199   :  { %1147 = vmatpush3.bf16.msra.mxu1 %v1146_v47  ;;  %v575_v47 = vld [vmem:[#allocation13 + $0x70] sm:$0xff] }
 0x19a   :  { %1148 = vmatprep.subr.bf16.mxu1 %v1502_v0 }
 0x19d   :  { %1150 = vmatpush3.bf16.msra.mxu1 %v1149_v55 }
 0x19e   :  { %1151 = vmatprep.subr.bf16.mxu1 %v1502_v0 }
 0x1a1   :  { %1153 = vmatpush3.bf16.msra.mxu1 %v1152_v58  ;;  %v1197_v58 = vpack.c.bf16 %v660_v57, %v659_v56 }
 0x1a2   :  { %1154 = vmatprep.subr.bf16.mxu1 %v1502_v0 }
 0x1a5   :  { %1156 = vmatpush3.bf16.msra.mxu1 %v1155_v61  ;;  %v663_v61 = vld [vmem:[#allocation14 + $0x40] sm:$0xff] }
 0x1a6   :  { %1157 = vmatprep.subr.bf16.mxu1 %v1502_v0  ;;  %v1203_v63 = vpack.c.bf16 %v664_v62, %v663_v61 }
 0x1a9   :  { %1159 = vmatpush3.bf16.msra.mxu1 %v1158_v2  ;;  %v665_v2 = vld [vmem:[#allocation14 + $0x50] sm:$0xff] }
 0x1aa   :  { %1160 = vmatprep.subr.bf16.mxu1 %v1502_v0  ;;  %v1206_v4 = vpack.c.bf16 %v666_v3, %v665_v2 }
 0x1ad   :  { %1162 = vmatpush3.bf16.msra.mxu1 %v1161_v5  ;;  %v667_v5 = vld [vmem:[#allocation14 + $0x60] sm:$0xff] }
 0x1ae   :  { %1163 = vmatprep.subr.bf16.mxu1 %v1502_v0  ;;  %v1209_v7 = vpack.c.bf16 %v668_v6, %v667_v5 }
 0x1b1   :  { %1165 = vmatpush3.bf16.msra.mxu1 %v1164_v8  ;;  %v799_v8 = vld [vmem:[%s1825_s9] ss:$0 sm:$0xff]  ;;  %s767_s9 = sshll.u32 %s1505_s0, 4  ;;  %s768_s9 = int_to_ptr.vmem [resolvable:$true] %s767_s9 }
 0x1b2   :  { %1190 = vmatprep.subr.bf16.mxu1 %v1502_v0  ;;  %s1410_s18 = scalar_lea.vmem %s768_s9, 128  ;;  %p1415_p9 = scmp.lt.s32.totalorder %s768_s9, %s768_s9 }
 0x1b3   :  { %p1411_p8 = scmp.ne.s32.totalorder %s768_s9, %s1410_s18  ;;  %p1416_p10 = scmp.lt.s32.totalorder %s1410_s18, %s1410_s18 }
 0x1b5   :  { %p1417_p11 = por %p1416_p10, %p1415_p9 }
 0x1b7   :  { %p1418_p12 = pnand %p1417_p11, %p1411_p8 }
 0x267   :  { %v341_v49 = vpop.f32.mrb[0].mxu1 }
 0x268   :  { %v342_v50 = vadd.f32 %v798_v48, %v341_v49  ;;  %v956_v51 = vpop.f32.mrb[1].mxu1  ;;  %v576_v48 = vld [vmem:[#allocation13 + $0x78] sm:$0xff] }
 0x269   :  { %v1188_v49 = vpack.c.bf16 %v576_v48, %v575_v47  ;;  %v656_v51 = vld [vmem:[#allocation14 + $0x8] sm:$0xff] }
 0x26a   :  { %v345_v52 = vmax.f32 %v342_v50, 0.0  ;;  %v655_v50 = vld [vmem:[#allocation14] sm:$0xff] }
 0x26b   :  { %v1191_v53 = vpack.c.bf16 %v656_v51, %v655_v50 }
 0x26c   :  { %455 = vmatmul.mubr.f32.vlgmr.msra.gmra.mrb[2].mxu0 %v345_v52  ;;  %v657_v52 = vld [vmem:[#allocation14 + $0x10] sm:$0xff] }
 0x26d   :  { %1024 = vmatprep.mubr.msk.f32.mxu0 %vm1503_vm0, %v1504_v1  ;;  %1168 = vmatpush3.bf16.msra.mxu0 %v1167_v12  ;;  %v1194_v55 = vpack.c.bf16 %v658_v54, %v657_v52 }
 0x26e   :  { %1169 = vmatprep.subr.bf16.mxu0 %v1502_v0 }
 0x271   :  { %1171 = vmatpush3.bf16.msra.mxu0 %v1170_v14  ;;  %v670_v14 = vld [vmem:[#allocation14 + $0x78] sm:$0xff] }
 0x272   :  { %1172 = vmatprep.subr.bf16.mxu0 %v1502_v0  ;;  %v1212_v15 = vpack.c.bf16 %v670_v14, %v669_v13 }
 0x275   :  { %1174 = vmatpush3.bf16.msra.mxu0 %v1173_v17 }
 0x276   :  { %1175 = vmatprep.subr.bf16.mxu0 %v1502_v0 }
 0x279   :  { %1177 = vmatpush3.bf16.msra.mxu0 %v1176_v20 }
 0x27a   :  { %1178 = vmatprep.subr.bf16.mxu0 %v1502_v0 }
 0x27d   :  { %1180 = vmatpush3.bf16.msra.mxu0 %v1179_v23 }
 0x27e   :  { %1181 = vmatprep.subr.bf16.mxu0 %v1502_v0 }
 0x281   :  { %1183 = vmatpush3.bf16.msra.mxu0 %v1182_v26 }
 0x282   :  { %1184 = vmatprep.subr.bf16.mxu0 %v1502_v0 }
 0x285   :  { %1186 = vmatpush3.bf16.msra.mxu0 %v1185_v29 }
 0x286   :  { %1187 = vmatprep.subr.bf16.mxu0 %v1502_v0 }
 0x289   :  { %1189 = vmatpush3.bf16.msra.mxu0 %v1188_v49 }
 0x33f   :  { %v456_v37 = vpop.f32.mrb[2].mxu0 }
 0x340   :  { %v457_v38 = vadd.f32 %v456_v37, %v383_v35  ;;  %v458_v39 = vpop.f32.mrb[3].mxu0 }
 0x341   :  { %v459_v40 = vadd.f32 %v458_v39, %v387_v36 }
 0x342   :  { %749 = vst [vmem:[#allocation17] sm:$0xff] %v457_v38 }
 0x343   :  { %v462_v41 = vmul.f32 0.5, %v459_v40  ;;  %750 = vst [vmem:[#allocation19] sm:$0xff] %v459_v40 }
 0x345   :  { %v463_v42 = vmul.f32 1.442695, %v462_v41 }
 0x347   :  { %1232 = vpow2.f32 %v463_v42 }
 0x351   :  { %v1233_v44 = vpop.eup %1232 }
 0x352   :  { %v465_v45 = vmul.f32 %v1233_v44, %v461_v43 }
 0x354   :  { %v466_v46 = vadd.f32 %v465_v45, %v457_v38 }
 0x356   :  { %990 = vmatmul.mubr.f32.vlgmr.msra.gmra.mrb[2].mxu1 %v466_v46 }
 0x357   :  { %1059 = vmatprep.mubr.msk.f32.mxu1 %vm1503_vm0, %v1504_v1  ;;  %1192 = vmatpush3.bf16.msra.mxu1 %v1191_v53  ;;  %v661_v1 = vld [vmem:[#allocation14 + $0x30] sm:$0xff] }
 0x358   :  { %1193 = vmatprep.subr.bf16.mxu1 %v1502_v0  ;;  %v1200_v60 = vpack.c.bf16 %v662_v59, %v661_v1 }
 0x35b   :  { %1195 = vmatpush3.bf16.msra.mxu1 %v1194_v55 }
 0x35c   :  { %1196 = vmatprep.subr.bf16.mxu1 %v1502_v0 }
 0x35f   :  { %1198 = vmatpush3.bf16.msra.mxu1 %v1197_v58 }
 0x360   :  { %1199 = vmatprep.subr.bf16.mxu1 %v1502_v0 }
 0x363   :  { %1201 = vmatpush3.bf16.msra.mxu1 %v1200_v60 }
 0x364   :  { %1202 = vmatprep.subr.bf16.mxu1 %v1502_v0 }
 0x367   :  { %1204 = vmatpush3.bf16.msra.mxu1 %v1203_v63 }
 0x368   :  { %1205 = vmatprep.subr.bf16.mxu1 %v1502_v0 }
 0x36b   :  { %1207 = vmatpush3.bf16.msra.mxu1 %v1206_v4 }
 0x36c   :  { %1208 = vmatprep.subr.bf16.mxu1 %v1502_v0 }
 0x36f   :  { %1210 = vmatpush3.bf16.msra.mxu1 %v1209_v7 }
 0x370   :  { %1211 = vmatprep.subr.bf16.mxu1 %v1502_v0 }
 0x373   :  { %1213 = vmatpush3.bf16.msra.mxu1 %v1212_v15 }
 0x429   :  { %v556_v9 = vpop.f32.mrb[2].mxu1 }
 0x42a   :  { %v557_v10 = vadd.f32 %v799_v8, %v556_v9  ;;  %v991_v11 = vpop.f32.mrb[3].mxu1 }
 0x42c   :  { %v560_v12 = vmax.f32 %v557_v10, 0.0 }
 0x42e   :  { %1025 = vmatmul.mubr.f32.vlgmr.msra.gmra.mrb[4].mxu0 %v560_v12 }
 0x501   :  { %v650_v17 = vpop.f32.mrb[4].mxu0 }
 0x502   :  { %v651_v18 = vadd.f32 %v800_v16, %v650_v17  ;;  %v1026_v0 = vpop.f32.mrb[5].mxu0 }
 0x504   :  { %v654_v19 = vmax.f32 %v651_v18, 0.0 }
 0x506   :  { %1060 = vmatmul.mubr.f32.vlgmr.msra.gmra.mrb[4].mxu1 %v654_v19 }
 0x507   :  { %1421 = shalt.err (!%p1418_p12)
}
 0x508   :  { %s1422_s20 = scalar_lea.hbm %s1831_s15, 128 }
 0x509   :  { %p1423_p13 = scmp.ne.s32.totalorder %s1831_s15, %s1422_s20  ;;  %p1426_p0 = scmp.lt.u32.totalorder %s1422_s20, %s1831_s15 }
 0x50b   :  { %p1428_p1 = pnand %p1426_p0, %p1423_p13 }
 0x50d   :  { %1431 = shalt.err (!%p1428_p1)
}
 0x50e   :  { %770 = dma.vmem_to_hbm [thread:$0]  %s768_s9, 128, %s1831_s15, [#allocation18]  }
 0x50f   :  { %s1506_s23 = smov [#allocation19]  }
 0x510   :  { %s777_s8 = sshll.u32 %s1506_s23, 4  ;;  %s778_s8 = int_to_ptr.vmem [resolvable:$true] %s777_s8 }
 0x511   :  { %s1432_s21 = scalar_lea.vmem %s778_s8, 128  ;;  %p1437_p3 = scmp.lt.s32.totalorder %s778_s8, %s778_s8 }
 0x512   :  { %p1433_p2 = scmp.ne.s32.totalorder %s778_s8, %s1432_s21  ;;  %p1438_p4 = scmp.lt.s32.totalorder %s1432_s21, %s1432_s21 }
 0x514   :  { %p1439_p5 = por %p1438_p4, %p1437_p3 }
 0x516   :  { %p1440_p6 = pnand %p1439_p5, %p1433_p2 }
 0x518   :  { %1443 = shalt.err (!%p1440_p6)
}
 0x519   :  { %s1444_s12 = scalar_lea.hbm %s1832_s16, 128 }
 0x51a   :  { %p1445_p7 = scmp.ne.s32.totalorder %s1832_s16, %s1444_s12  ;;  %p1448_p8 = scmp.lt.u32.totalorder %s1444_s12, %s1832_s16 }
 0x51c   :  { %p1450_p9 = pnand %p1448_p8, %p1445_p7 }
 0x51e   :  { %1453 = shalt.err (!%p1450_p9)
}
 0x51f   :  { %780 = dma.vmem_to_hbm [thread:$0]  %s778_s8, 128, %s1832_s16, [#allocation18]   ;;  %v801_v20 = vld [vmem:[%s1829_s13] ss:$0 sm:$0xff] }
 0x520   :  { %s1507_s19 = smov [#allocation16]  }
 0x521   :  { %s757_s29 = sshll.u32 %s1507_s19, 4  ;;  %s758_s29 = int_to_ptr.vmem [resolvable:$true] %s757_s29 }
 0x522   :  { %s1454_s0 = scalar_lea.vmem %s758_s29, 128  ;;  %p1459_p11 = scmp.lt.s32.totalorder %s758_s29, %s758_s29 }
 0x523   :  { %p1455_p10 = scmp.ne.s32.totalorder %s758_s29, %s1454_s0  ;;  %p1460_p12 = scmp.lt.s32.totalorder %s1454_s0, %s1454_s0 }
 0x525   :  { %p1461_p13 = por %p1460_p12, %p1459_p11 }
 0x527   :  { %p1462_p0 = pnand %p1461_p13, %p1455_p10 }
 0x5d9   :  { %v744_v21 = vpop.f32.mrb[4].mxu1 }
 0x5da   :  { %v745_v22 = vadd.f32 %v801_v20, %v744_v21  ;;  %v1061_v23 = vpop.f32.mrb[5].mxu1 }
 0x5dc   :  { %748 = vst [vmem:[#allocation16] sm:$0xff] %v745_v22 }
 0x5dd   :  { %1465 = shalt.err (!%p1462_p0)
}
 0x5de   :  { %s1466_s18 = scalar_lea.hbm %s1830_s14, 128 }
 0x5df   :  { %p1467_p1 = scmp.ne.s32.totalorder %s1830_s14, %s1466_s18  ;;  %p1470_p2 = scmp.lt.u32.totalorder %s1466_s18, %s1830_s14 }
 0x5e1   :  { %p1472_p3 = pnand %p1470_p2, %p1467_p1 }
 0x5e3   :  { %1475 = shalt.err (!%p1472_p3)
}
 0x5e4   :  { %760 = dma.vmem_to_hbm [thread:$0]  %s758_s29, 128, %s1830_s14, [#allocation4]  }
 0x5e5   :  { %1486 = dma.done.wait [#allocation4], 128  }
 0x5e6   :  { %1487 = vsyncadd [#allocation4], 4294967168 }
 0x5e7   :  { %1488 = dma.done.wait [#allocation18], 256  }
 0x5e8   :  { %1489 = vsyncadd [#allocation18], 4294967040 }
 0x5e9   :  { %790 = vsyncpa [#allocation3], 1 }
 0x5ea   :  { %791 = vsyncpa [#allocation6], 1 }
 0x5eb   :  { %792 = vsyncpa [#allocation9], 1 }
 0x5ec   :  { %793 = vsyncpa [#allocation12], 1 }
 0x5ed   :  { %794 = vsyncpa [#allocation15], 1 }
 0x5ee   :  { %795 = vsyncpa [#allocation4], 1 }
 0x5ef   :  { %796 = vsyncpa [#allocation18], 1 }

</bundles_post_ra>
